<compile_context>
chip_gen: v6e
topology: v6e:2x2x1
jax: 0.10.0
libtpu: 0.0.40
codegen_flags: <defaults>
</compile_context>

<pallas_src>
import jax
import jax.numpy as jnp
from jax.experimental import pallas as pl
from jax.experimental.pallas import tpu as pltpu

LANE = 128
# Set to jnp.bfloat16 on v6e/v7x for ~2x MXU rate; accumulation (preferred_element_type)
# and the whole elementwise epilogue (bias, ReLU, residual) stay in f32 (v5e-safe).
MXU_DTYPE = jnp.float32


def bottleneck_kernel(x_ref, w1_ref, b1_ref,
                      w2_ref, b2_ref,
                      w3_ref, b3_ref,
                      o_ref, pad_ref):
    """Fused Bottleneck forward for a block of NB batch images.

    x_ref   : (NB, H, W, C)       input tile (C == 4 * planes, lane-padded)
    w1_ref  : (C, P)              1x1 conv weight (BN1 scale pre-folded)
    w2_ref  : (3, 3, P, P)        3x3 conv weight, HWIO (BN2 scale pre-folded)
    w3_ref  : (P, C)              1x1 conv weight (BN3 scale pre-folded)
    b*_ref  : (1, Cx)             folded BN bias
    o_ref   : (NB, H, W, C)       output tile
    pad_ref : (NB, H+2, W+2, P)   VMEM zero-padded intermediate for the 3x3 conv
    """
    NB, H, W, C = x_ref.shape
    P = w2_ref.shape[3]
    M = NB * H * W

    # Parameter loads hoisted out of all loops (loaded once per grid step).
    w1 = w1_ref[...].astype(MXU_DTYPE)
    w3 = w3_ref[...].astype(MXU_DTYPE)
    b1 = b1_ref[...]
    b2 = b2_ref[...]
    b3 = b3_ref[...]

    # ---- stage 1: conv1 (1x1) + bn1 + relu as ONE (M, C) x (C, P) matmul ----
    x2d = x_ref[...].reshape(M, C)                       # layout-preserving reshape
    t1 = jnp.dot(x2d.astype(MXU_DTYPE), w1, preferred_element_type=jnp.float32)
    t1 = jnp.maximum(t1 + b1, 0.0)                       # (M, P); BN scale folded in w1

    # Zero only the four border slabs (not the whole scratch); the interior is fully
    # overwritten below.  Done every step (not under pl.when(program_id == 0)) so it
    # remains correct when the "parallel" batch axis is sharded across cores.
    zrow = jnp.zeros((NB, 1, W + 2, P), jnp.float32)
    zcol = jnp.zeros((NB, H, 1, P), jnp.float32)
    pad_ref[:, 0:1, :, :] = zrow
    pad_ref[:, H + 1:H + 2, :, :] = zrow
    pad_ref[:, 1:H + 1, 0:1, :] = zcol
    pad_ref[:, 1:H + 1, W + 1:W + 2, :] = zcol
    pad_ref[:, 1:H + 1, 1:W + 1, :] = t1.reshape(NB, H, W, P)   # one dense interior store

    # ---- stage 2: conv2 (3x3, stride 1, pad 1) as 9 full-image matmuls ------
    # Read one full-width row band per dy (H-axis offset only: just a base-address
    # change, no sublane shuffling), then do the dx shifts on the in-register band.
    acc = jnp.zeros((M, P), jnp.float32)
    for dy in range(3):
        band = pad_ref[:, dy:dy + H, :, :]               # (NB, H, W+2, P)
        for dx in range(3):
            win = band[:, :, dx:dx + W, :].reshape(M, P)
            acc = acc + jnp.dot(win.astype(MXU_DTYPE),
                                w2_ref[dy, dx].astype(MXU_DTYPE),
                                preferred_element_type=jnp.float32)
    t2 = jnp.maximum(acc + b2, 0.0)                      # (M, P); BN scale folded in w2

    # ---- stage 3: conv3 (1x1) + bn3 + residual add + relu on the full slab --
    t3 = jnp.dot(t2.astype(MXU_DTYPE), w3, preferred_element_type=jnp.float32)
    t3 = t3 + b3                                         # (M, C); BN scale folded in w3
    o_ref[...] = jnp.maximum(t3 + x2d, 0.0).reshape(NB, H, W, C)


def _pad_axis(a, axis, mult=LANE):
    pad = (-a.shape[axis]) % mult
    if pad == 0:
        return a
    widths = [(0, 0)] * a.ndim
    widths[axis] = (0, pad)
    return jnp.pad(a, widths)


def bottleneck_pallas(x_nhwc, w1, s1, b1, w2, s2, b2, w3, s3, b3, *, nb=1):
    N, H, W, Cin = x_nhwc.shape
    P = w1.shape[1]
    Cout = w3.shape[1]
    assert Cin == Cout, "stride=1 / downsample=None requires inplanes == planes*expansion"
    assert N % nb == 0

    # Fold BN scales into the conv output-channel axis (done once, on tiny weight
    # tensors, outside the kernel).  Only biases travel into the kernel.
    w1f = w1 * s1                              # (Cin, P)   * (1, P)
    w2f = w2 * s2.reshape(1, 1, 1, -1)         # (3,3,P,P)  * (1,1,1,P)
    w3f = w3 * s3                              # (P, Cout)  * (1, Cout)

    # Lane-pad channel dims to multiples of 128 (dense stores, useful MXU K/N).
    xp = _pad_axis(x_nhwc, 3)
    w1p = _pad_axis(_pad_axis(w1f, 0), 1)
    w2p = _pad_axis(_pad_axis(w2f, 2), 3)
    w3p = _pad_axis(_pad_axis(w3f, 0), 1)
    b1p = _pad_axis(b1, 1)
    b2p = _pad_axis(b2, 1)
    b3p = _pad_axis(b3, 1)

    Cp = xp.shape[3]
    Pp = w1p.shape[1]

    grid_spec = pltpu.PrefetchScalarGridSpec(
        num_scalar_prefetch=0,
        grid=(N // nb,),
        in_specs=[
            pl.BlockSpec((nb, H, W, Cp), lambda n: (n, 0, 0, 0)),
            pl.BlockSpec((Cp, Pp), lambda n: (0, 0)),
            pl.BlockSpec((1, Pp), lambda n: (0, 0)),
            pl.BlockSpec((3, 3, Pp, Pp), lambda n: (0, 0, 0, 0)),
            pl.BlockSpec((1, Pp), lambda n: (0, 0)),
            pl.BlockSpec((Pp, Cp), lambda n: (0, 0)),
            pl.BlockSpec((1, Cp), lambda n: (0, 0)),
        ],
        out_specs=pl.BlockSpec((nb, H, W, Cp), lambda n: (n, 0, 0, 0)),
        scratch_shapes=[pltpu.VMEM((nb, H + 2, W + 2, Pp), jnp.float32)],
    )
    out = pl.pallas_call(
        bottleneck_kernel,
        out_shape=jax.ShapeDtypeStruct((N, H, W, Cp), jnp.float32),
        grid_spec=grid_spec,
        compiler_params=pltpu.CompilerParams(
            dimension_semantics=("parallel",)),   # batch images are independent
    )(xp, w1p, b1p, w2p, b2p, w3p, b3p)
    return out[..., :Cout]


def ref_forward(x_nhwc, w1, s1, b1, w2, s2, b2, w3, s3, b3):
    """Pure-JAX reference (NHWC, eval-mode BN applied as scale/bias AFTER each conv)."""
    def conv(x, w, pad):
        return jax.lax.conv_general_dilated(
            x, w, window_strides=(1, 1), padding=pad,
            dimension_numbers=("NHWC", "HWIO", "NHWC"))
    t = conv(x_nhwc, w1.reshape(1, 1, *w1.shape), "VALID")
    t = jnp.maximum(t * s1 + b1, 0.0)
    t = conv(t, w2, "SAME")
    t = jnp.maximum(t * s2 + b2, 0.0)
    t = conv(t, w3.reshape(1, 1, *w3.shape), "VALID")
    t = t * s3 + b3
    return jnp.maximum(t + x_nhwc, 0.0)


def fold_bn(gamma, beta, mean, var, eps=1e-5):
    scale = gamma / jnp.sqrt(var + eps)
    bias = beta - mean * scale
    return scale.reshape(1, -1), bias.reshape(1, -1)


if __name__ == "__main__":
    # Small shapes consistent with the module: planes=4, inplanes=planes*4=16,
    # stride=1, downsample=None.  NCHW input: (2, 16, 8, 8).
    N, H, W = 2, 8, 8
    planes = 4
    inplanes = planes * 4          # expansion = 4
    c_out = planes * 4

    key = jax.random.PRNGKey(0)
    ks = jax.random.split(key, 16)

    x_nchw = jax.random.normal(ks[0], (N, inplanes, H, W), jnp.float32)
    x_nhwc = jnp.transpose(x_nchw, (0, 2, 3, 1))

    # Conv weights, initialized directly in matmul / HWIO layout (synthetic init).
    w1 = 0.2 * jax.random.normal(ks[1], (inplanes, planes), jnp.float32)
    w2 = 0.2 * jax.random.normal(ks[2], (3, 3, planes, planes), jnp.float32)
    w3 = 0.2 * jax.random.normal(ks[3], (planes, c_out), jnp.float32)

    def bn_params(k, c):
        k1, k2, k3, k4 = jax.random.split(k, 4)
        gamma = 1.0 + 0.1 * jax.random.normal(k1, (c,), jnp.float32)
        beta = 0.1 * jax.random.normal(k2, (c,), jnp.float32)
        mean = 0.1 * jax.random.normal(k3, (c,), jnp.float32)
        var = 0.5 + jnp.abs(jax.random.normal(k4, (c,), jnp.float32))
        return fold_bn(gamma, beta, mean, var)

    s1, b1 = bn_params(ks[4], planes)
    s2, b2 = bn_params(ks[5], planes)
    s3, b3 = bn_params(ks[6], c_out)

    out_nhwc = bottleneck_pallas(x_nhwc, w1, s1, b1, w2, s2, b2, w3, s3, b3, nb=1)
    out_nhwc = jax.block_until_ready(out_nhwc)
    out_nchw = jnp.transpose(out_nhwc, (0, 3, 1, 2))   # back to PyTorch layout

    ref = ref_forward(x_nhwc, w1, s1, b1, w2, s2, b2, w3, s3, b3)
    assert out_nchw.shape == x_nchw.shape
    assert jnp.allclose(out_nhwc, ref, atol=1e-4, rtol=1e-4), (
        float(jnp.max(jnp.abs(out_nhwc - ref))))

    # TODO(synk): training-mode BatchNorm (batch statistics) and the optional
    # `downsample` / stride>1 branch are not implemented; eval-mode BN is folded instead.
    print("KERNEL_OK")
</pallas_src>

<mosaic_0001>
module attributes {stable_mosaic.version = 11 : i64} {
  func.func @bottleneck_kernel(%arg0: i32, %arg1: memref<1x8x8x128xf32, #tpu.memory_space<vmem>>, %arg2: memref<128x128xf32, #tpu.memory_space<vmem>>, %arg3: memref<1x128xf32, #tpu.memory_space<vmem>>, %arg4: memref<3x3x128x128xf32, #tpu.memory_space<vmem>>, %arg5: memref<1x128xf32, #tpu.memory_space<vmem>>, %arg6: memref<128x128xf32, #tpu.memory_space<vmem>>, %arg7: memref<1x128xf32, #tpu.memory_space<vmem>>, %arg8: memref<1x8x8x128xf32, #tpu.memory_space<vmem>>, %arg9: memref<1x10x10x128xf32, #tpu.memory_space<vmem>>) attributes {dimension_semantics = [#tpu.dimension_semantics<parallel>], iteration_bounds = array<i64: 2>, scalar_prefetch = 0 : i64, scratch_operands = 1 : i64, tpu.core_type = #tpu.core_type<tc>, window_params = [{transform_indices = @transform_0, window_bounds = array<i64: 1, 8, 8, 128>}, {pipeline_mode = #tpu.pipeline_mode<synchronous>, transform_indices = @transform_1, window_bounds = array<i64: 128, 128>}, {pipeline_mode = #tpu.pipeline_mode<synchronous>, transform_indices = @transform_2, window_bounds = array<i64: 1, 128>}, {pipeline_mode = #tpu.pipeline_mode<synchronous>, transform_indices = @transform_3, window_bounds = array<i64: 3, 3, 128, 128>}, {pipeline_mode = #tpu.pipeline_mode<synchronous>, transform_indices = @transform_4, window_bounds = array<i64: 1, 128>}, {pipeline_mode = #tpu.pipeline_mode<synchronous>, transform_indices = @transform_5, window_bounds = array<i64: 128, 128>}, {pipeline_mode = #tpu.pipeline_mode<synchronous>, transform_indices = @transform_6, window_bounds = array<i64: 1, 128>}, {transform_indices = @transform_7, window_bounds = array<i64: 1, 8, 8, 128>}]} {
    %c0 = arith.constant 0 : index
    %c0_0 = arith.constant 0 : index
    %0 = vector.load %arg2[%c0, %c0_0] : memref<128x128xf32, #tpu.memory_space<vmem>>, vector<128x128xf32>
    %c0_1 = arith.constant 0 : index
    %c0_2 = arith.constant 0 : index
    %1 = vector.load %arg6[%c0_1, %c0_2] : memref<128x128xf32, #tpu.memory_space<vmem>>, vector<128x128xf32>
    %c0_3 = arith.constant 0 : index
    %c0_4 = arith.constant 0 : index
    %2 = vector.load %arg3[%c0_3, %c0_4] : memref<1x128xf32, #tpu.memory_space<vmem>>, vector<1x128xf32>
    %c0_5 = arith.constant 0 : index
    %c0_6 = arith.constant 0 : index
    %3 = vector.load %arg5[%c0_5, %c0_6] : memref<1x128xf32, #tpu.memory_space<vmem>>, vector<1x128xf32>
    %c0_7 = arith.constant 0 : index
    %c0_8 = arith.constant 0 : index
    %4 = vector.load %arg7[%c0_7, %c0_8] : memref<1x128xf32, #tpu.memory_space<vmem>>, vector<1x128xf32>
    %c0_9 = arith.constant 0 : index
    %c0_10 = arith.constant 0 : index
    %c0_11 = arith.constant 0 : index
    %c0_12 = arith.constant 0 : index
    %5 = vector.load %arg1[%c0_9, %c0_10, %c0_11, %c0_12] : memref<1x8x8x128xf32, #tpu.memory_space<vmem>>, vector<1x8x8x128xf32>
    %6 = vector.shape_cast %5 : vector<1x8x8x128xf32> to vector<64x128xf32>
    %cst = arith.constant dense<0.000000e+00> : vector<64x128xf32>
    %7 = tpu.matmul %6, %0, %cst {dimension_numbers = #tpu.dot_dimension_numbers<[1], [0], [0], [1], [0, 0, 1, 1], [], []>} : vector<64x128xf32>, vector<128x128xf32>, vector<64x128xf32> -> vector<64x128xf32>
    %8 = vector.broadcast %2 : vector<1x128xf32> to vector<64x128xf32>
    %9 = arith.addf %7, %8 : vector<64x128xf32>
    %cst_13 = arith.constant 0.000000e+00 : f32
    %10 = vector.broadcast %cst_13 : f32 to vector<64x128xf32>
    %11 = arith.maximumf %9, %10 : vector<64x128xf32>
    %cst_14 = arith.constant 0.000000e+00 : f32
    %12 = vector.broadcast %cst_14 : f32 to vector<1x1x10x128xf32>
    %cst_15 = arith.constant 0.000000e+00 : f32
    %13 = vector.broadcast %cst_15 : f32 to vector<1x8x1x128xf32>
    %c0_16 = arith.constant 0 : index
    %c0_17 = arith.constant 0 : index
    %c0_18 = arith.constant 0 : index
    %c0_19 = arith.constant 0 : index
    %14 = vector.load %arg9[%c0_16, %c0_17, %c0_18, %c0_19] : memref<1x10x10x128xf32, #tpu.memory_space<vmem>>, vector<1x1x10x128xf32>
    tpu.vector_store %arg9[%c0_16, %c0_17, %c0_18, %c0_19], %12 {strides = array<i32>} : memref<1x10x10x128xf32, #tpu.memory_space<vmem>>, vector<1x1x10x128xf32>,
    %c0_20 = arith.constant 0 : index
    %c9 = arith.constant 9 : index
    %c0_21 = arith.constant 0 : index
    %c0_22 = arith.constant 0 : index
    %15 = vector.load %arg9[%c0_20, %c9, %c0_21, %c0_22] : memref<1x10x10x128xf32, #tpu.memory_space<vmem>>, vector<1x1x10x128xf32>
    tpu.vector_store %arg9[%c0_20, %c9, %c0_21, %c0_22], %12 {strides = array<i32>} : memref<1x10x10x128xf32, #tpu.memory_space<vmem>>, vector<1x1x10x128xf32>,
    %c0_23 = arith.constant 0 : index
    %c1 = arith.constant 1 : index
    %c0_24 = arith.constant 0 : index
    %c0_25 = arith.constant 0 : index
    %16 = vector.load %arg9[%c0_23, %c1, %c0_24, %c0_25] : memref<1x10x10x128xf32, #tpu.memory_space<vmem>>, vector<1x8x1x128xf32>
    tpu.vector_store %arg9[%c0_23, %c1, %c0_24, %c0_25], %13 {strides = array<i32>} : memref<1x10x10x128xf32, #tpu.memory_space<vmem>>, vector<1x8x1x128xf32>,
    %c0_26 = arith.constant 0 : index
    %c1_27 = arith.constant 1 : index
    %c9_28 = arith.constant 9 : index
    %c0_29 = arith.constant 0 : index
    %17 = vector.load %arg9[%c0_26, %c1_27, %c9_28, %c0_29] : memref<1x10x10x128xf32, #tpu.memory_space<vmem>>, vector<1x8x1x128xf32>
    tpu.vector_store %arg9[%c0_26, %c1_27, %c9_28, %c0_29], %13 {strides = array<i32>} : memref<1x10x10x128xf32, #tpu.memory_space<vmem>>, vector<1x8x1x128xf32>,
    %18 = vector.shape_cast %11 : vector<64x128xf32> to vector<1x8x8x128xf32>
    %c0_30 = arith.constant 0 : index
    %c1_31 = arith.constant 1 : index
    %c1_32 = arith.constant 1 : index
    %c0_33 = arith.constant 0 : index
    %19 = vector.load %arg9[%c0_30, %c1_31, %c1_32, %c0_33] : memref<1x10x10x128xf32, #tpu.memory_space<vmem>>, vector<1x8x8x128xf32>
    tpu.vector_store %arg9[%c0_30, %c1_31, %c1_32, %c0_33], %18 {strides = array<i32>} : memref<1x10x10x128xf32, #tpu.memory_space<vmem>>, vector<1x8x8x128xf32>,
    %cst_34 = arith.constant 0.000000e+00 : f32
    %20 = vector.broadcast %cst_34 : f32 to vector<64x128xf32>
    %c0_35 = arith.constant 0 : index
    %c0_36 = arith.constant 0 : index
    %c0_37 = arith.constant 0 : index
    %c0_38 = arith.constant 0 : index
    %21 = vector.load %arg9[%c0_35, %c0_36, %c0_37, %c0_38] : memref<1x10x10x128xf32, #tpu.memory_space<vmem>>, vector<1x8x10x128xf32>
    %22 = vector.extract_strided_slice %21 {offsets = [0, 0, 0, 0], sizes = [1, 8, 8, 128], strides = [1, 1, 1, 1]} : vector<1x8x10x128xf32> to vector<1x8x8x128xf32>
    %23 = vector.shape_cast %22 : vector<1x8x8x128xf32> to vector<64x128xf32>
    %c0_39 = arith.constant 0 : index
    %c0_40 = arith.constant 0 : index
    %c0_41 = arith.constant 0 : index
    %c0_42 = arith.constant 0 : index
    %24 = vector.load %arg4[%c0_39, %c0_40, %c0_41, %c0_42] : memref<3x3x128x128xf32, #tpu.memory_space<vmem>>, vector<1x1x128x128xf32>
    %25 = vector.shape_cast %24 : vector<1x1x128x128xf32> to vector<128x128xf32>
    %cst_43 = arith.constant dense<0.000000e+00> : vector<64x128xf32>
    %26 = tpu.matmul %23, %25, %cst_43 {dimension_numbers = #tpu.dot_dimension_numbers<[1], [0], [0], [1], [0, 0, 1, 1], [], []>} : vector<64x128xf32>, vector<128x128xf32>, vector<64x128xf32> -> vector<64x128xf32>
    %27 = arith.addf %20, %26 : vector<64x128xf32>
    %28 = vector.extract_strided_slice %21 {offsets = [0, 0, 1, 0], sizes = [1, 8, 8, 128], strides = [1, 1, 1, 1]} : vector<1x8x10x128xf32> to vector<1x8x8x128xf32>
    %29 = vector.shape_cast %28 : vector<1x8x8x128xf32> to vector<64x128xf32>
    %c0_44 = arith.constant 0 : index
    %c1_45 = arith.constant 1 : index
    %c0_46 = arith.constant 0 : index
    %c0_47 = arith.constant 0 : index
    %30 = vector.load %arg4[%c0_44, %c1_45, %c0_46, %c0_47] : memref<3x3x128x128xf32, #tpu.memory_space<vmem>>, vector<1x1x128x128xf32>
    %31 = vector.shape_cast %30 : vector<1x1x128x128xf32> to vector<128x128xf32>
    %cst_48 = arith.constant dense<0.000000e+00> : vector<64x128xf32>
    %32 = tpu.matmul %29, %31, %cst_48 {dimension_numbers = #tpu.dot_dimension_numbers<[1], [0], [0], [1], [0, 0, 1, 1], [], []>} : vector<64x128xf32>, vector<128x128xf32>, vector<64x128xf32> -> vector<64x128xf32>
    %33 = arith.addf %27, %32 : vector<64x128xf32>
    %34 = vector.extract_strided_slice %21 {offsets = [0, 0, 2, 0], sizes = [1, 8, 8, 128], strides = [1, 1, 1, 1]} : vector<1x8x10x128xf32> to vector<1x8x8x128xf32>
    %35 = vector.shape_cast %34 : vector<1x8x8x128xf32> to vector<64x128xf32>
    %c0_49 = arith.constant 0 : index
    %c2 = arith.constant 2 : index
    %c0_50 = arith.constant 0 : index
    %c0_51 = arith.constant 0 : index
    %36 = vector.load %arg4[%c0_49, %c2, %c0_50, %c0_51] : memref<3x3x128x128xf32, #tpu.memory_space<vmem>>, vector<1x1x128x128xf32>
    %37 = vector.shape_cast %36 : vector<1x1x128x128xf32> to vector<128x128xf32>
    %cst_52 = arith.constant dense<0.000000e+00> : vector<64x128xf32>
    %38 = tpu.matmul %35, %37, %cst_52 {dimension_numbers = #tpu.dot_dimension_numbers<[1], [0], [0], [1], [0, 0, 1, 1], [], []>} : vector<64x128xf32>, vector<128x128xf32>, vector<64x128xf32> -> vector<64x128xf32>
    %39 = arith.addf %33, %38 : vector<64x128xf32>
    %c0_53 = arith.constant 0 : index
    %c1_54 = arith.constant 1 : index
    %c0_55 = arith.constant 0 : index
    %c0_56 = arith.constant 0 : index
    %40 = vector.load %arg9[%c0_53, %c1_54, %c0_55, %c0_56] : memref<1x10x10x128xf32, #tpu.memory_space<vmem>>, vector<1x8x10x128xf32>
    %41 = vector.extract_strided_slice %40 {offsets = [0, 0, 0, 0], sizes = [1, 8, 8, 128], strides = [1, 1, 1, 1]} : vector<1x8x10x128xf32> to vector<1x8x8x128xf32>
    %42 = vector.shape_cast %41 : vector<1x8x8x128xf32> to vector<64x128xf32>
    %c1_57 = arith.constant 1 : index
    %c0_58 = arith.constant 0 : index
    %c0_59 = arith.constant 0 : index
    %c0_60 = arith.constant 0 : index
    %43 = vector.load %arg4[%c1_57, %c0_58, %c0_59, %c0_60] : memref<3x3x128x128xf32, #tpu.memory_space<vmem>>, vector<1x1x128x128xf32>
    %44 = vector.shape_cast %43 : vector<1x1x128x128xf32> to vector<128x128xf32>
    %cst_61 = arith.constant dense<0.000000e+00> : vector<64x128xf32>
    %45 = tpu.matmul %42, %44, %cst_61 {dimension_numbers = #tpu.dot_dimension_numbers<[1], [0], [0], [1], [0, 0, 1, 1], [], []>} : vector<64x128xf32>, vector<128x128xf32>, vector<64x128xf32> -> vector<64x128xf32>
    %46 = arith.addf %39, %45 : vector<64x128xf32>
    %47 = vector.extract_strided_slice %40 {offsets = [0, 0, 1, 0], sizes = [1, 8, 8, 128], strides = [1, 1, 1, 1]} : vector<1x8x10x128xf32> to vector<1x8x8x128xf32>
    %48 = vector.shape_cast %47 : vector<1x8x8x128xf32> to vector<64x128xf32>
    %c1_62 = arith.constant 1 : index
    %c1_63 = arith.constant 1 : index
    %c0_64 = arith.constant 0 : index
    %c0_65 = arith.constant 0 : index
    %49 = vector.load %arg4[%c1_62, %c1_63, %c0_64, %c0_65] : memref<3x3x128x128xf32, #tpu.memory_space<vmem>>, vector<1x1x128x128xf32>
    %50 = vector.shape_cast %49 : vector<1x1x128x128xf32> to vector<128x128xf32>
    %cst_66 = arith.constant dense<0.000000e+00> : vector<64x128xf32>
    %51 = tpu.matmul %48, %50, %cst_66 {dimension_numbers = #tpu.dot_dimension_numbers<[1], [0], [0], [1], [0, 0, 1, 1], [], []>} : vector<64x128xf32>, vector<128x128xf32>, vector<64x128xf32> -> vector<64x128xf32>
    %52 = arith.addf %46, %51 : vector<64x128xf32>
    %53 = vector.extract_strided_slice %40 {offsets = [0, 0, 2, 0], sizes = [1, 8, 8, 128], strides = [1, 1, 1, 1]} : vector<1x8x10x128xf32> to vector<1x8x8x128xf32>
    %54 = vector.shape_cast %53 : vector<1x8x8x128xf32> to vector<64x128xf32>
    %c1_67 = arith.constant 1 : index
    %c2_68 = arith.constant 2 : index
    %c0_69 = arith.constant 0 : index
    %c0_70 = arith.constant 0 : index
    %55 = vector.load %arg4[%c1_67, %c2_68, %c0_69, %c0_70] : memref<3x3x128x128xf32, #tpu.memory_space<vmem>>, vector<1x1x128x128xf32>
    %56 = vector.shape_cast %55 : vector<1x1x128x128xf32> to vector<128x128xf32>
    %cst_71 = arith.constant dense<0.000000e+00> : vector<64x128xf32>
    %57 = tpu.matmul %54, %56, %cst_71 {dimension_numbers = #tpu.dot_dimension_numbers<[1], [0], [0], [1], [0, 0, 1, 1], [], []>} : vector<64x128xf32>, vector<128x128xf32>, vector<64x128xf32> -> vector<64x128xf32>
    %58 = arith.addf %52, %57 : vector<64x128xf32>
    %c0_72 = arith.constant 0 : index
    %c2_73 = arith.constant 2 : index
    %c0_74 = arith.constant 0 : index
    %c0_75 = arith.constant 0 : index
    %59 = vector.load %arg9[%c0_72, %c2_73, %c0_74, %c0_75] : memref<1x10x10x128xf32, #tpu.memory_space<vmem>>, vector<1x8x10x128xf32>
    %60 = vector.extract_strided_slice %59 {offsets = [0, 0, 0, 0], sizes = [1, 8, 8, 128], strides = [1, 1, 1, 1]} : vector<1x8x10x128xf32> to vector<1x8x8x128xf32>
    %61 = vector.shape_cast %60 : vector<1x8x8x128xf32> to vector<64x128xf32>
    %c2_76 = arith.constant 2 : index
    %c0_77 = arith.constant 0 : index
    %c0_78 = arith.constant 0 : index
    %c0_79 = arith.constant 0 : index
    %62 = vector.load %arg4[%c2_76, %c0_77, %c0_78, %c0_79] : memref<3x3x128x128xf32, #tpu.memory_space<vmem>>, vector<1x1x128x128xf32>
    %63 = vector.shape_cast %62 : vector<1x1x128x128xf32> to vector<128x128xf32>
    %cst_80 = arith.constant dense<0.000000e+00> : vector<64x128xf32>
    %64 = tpu.matmul %61, %63, %cst_80 {dimension_numbers = #tpu.dot_dimension_numbers<[1], [0], [0], [1], [0, 0, 1, 1], [], []>} : vector<64x128xf32>, vector<128x128xf32>, vector<64x128xf32> -> vector<64x128xf32>
    %65 = arith.addf %58, %64 : vector<64x128xf32>
    %66 = vector.extract_strided_slice %59 {offsets = [0, 0, 1, 0], sizes = [1, 8, 8, 128], strides = [1, 1, 1, 1]} : vector<1x8x10x128xf32> to vector<1x8x8x128xf32>
    %67 = vector.shape_cast %66 : vector<1x8x8x128xf32> to vector<64x128xf32>
    %c2_81 = arith.constant 2 : index
    %c1_82 = arith.constant 1 : index
    %c0_83 = arith.constant 0 : index
    %c0_84 = arith.constant 0 : index
    %68 = vector.load %arg4[%c2_81, %c1_82, %c0_83, %c0_84] : memref<3x3x128x128xf32, #tpu.memory_space<vmem>>, vector<1x1x128x128xf32>
    %69 = vector.shape_cast %68 : vector<1x1x128x128xf32> to vector<128x128xf32>
    %cst_85 = arith.constant dense<0.000000e+00> : vector<64x128xf32>
    %70 = tpu.matmul %67, %69, %cst_85 {dimension_numbers = #tpu.dot_dimension_numbers<[1], [0], [0], [1], [0, 0, 1, 1], [], []>} : vector<64x128xf32>, vector<128x128xf32>, vector<64x128xf32> -> vector<64x128xf32>
    %71 = arith.addf %65, %70 : vector<64x128xf32>
    %72 = vector.extract_strided_slice %59 {offsets = [0, 0, 2, 0], sizes = [1, 8, 8, 128], strides = [1, 1, 1, 1]} : vector<1x8x10x128xf32> to vector<1x8x8x128xf32>
    %73 = vector.shape_cast %72 : vector<1x8x8x128xf32> to vector<64x128xf32>
    %c2_86 = arith.constant 2 : index
    %c2_87 = arith.constant 2 : index
    %c0_88 = arith.constant 0 : index
    %c0_89 = arith.constant 0 : index
    %74 = vector.load %arg4[%c2_86, %c2_87, %c0_88, %c0_89] : memref<3x3x128x128xf32, #tpu.memory_space<vmem>>, vector<1x1x128x128xf32>
    %75 = vector.shape_cast %74 : vector<1x1x128x128xf32> to vector<128x128xf32>
    %cst_90 = arith.constant dense<0.000000e+00> : vector<64x128xf32>
    %76 = tpu.matmul %73, %75, %cst_90 {dimension_numbers = #tpu.dot_dimension_numbers<[1], [0], [0], [1], [0, 0, 1, 1], [], []>} : vector<64x128xf32>, vector<128x128xf32>, vector<64x128xf32> -> vector<64x128xf32>
    %77 = arith.addf %71, %76 : vector<64x128xf32>
    %78 = vector.broadcast %3 : vector<1x128xf32> to vector<64x128xf32>
    %79 = arith.addf %77, %78 : vector<64x128xf32>
    %cst_91 = arith.constant 0.000000e+00 : f32
    %80 = vector.broadcast %cst_91 : f32 to vector<64x128xf32>
    %81 = arith.maximumf %79, %80 : vector<64x128xf32>
    %cst_92 = arith.constant dense<0.000000e+00> : vector<64x128xf32>
    %82 = tpu.matmul %81, %1, %cst_92 {dimension_numbers = #tpu.dot_dimension_numbers<[1], [0], [0], [1], [0, 0, 1, 1], [], []>} : vector<64x128xf32>, vector<128x128xf32>, vector<64x128xf32> -> vector<64x128xf32>
    %83 = vector.broadcast %4 : vector<1x128xf32> to vector<64x128xf32>
    %84 = arith.addf %82, %83 : vector<64x128xf32>
    %85 = arith.addf %84, %6 : vector<64x128xf32>
    %cst_93 = arith.constant 0.000000e+00 : f32
    %86 = vector.broadcast %cst_93 : f32 to vector<64x128xf32>
    %87 = arith.maximumf %85, %86 : vector<64x128xf32>
    %88 = vector.shape_cast %87 : vector<64x128xf32> to vector<1x8x8x128xf32>
    %c0_94 = arith.constant 0 : index
    %c0_95 = arith.constant 0 : index
    %c0_96 = arith.constant 0 : index
    %c0_97 = arith.constant 0 : index
    %89 = vector.load %arg8[%c0_94, %c0_95, %c0_96, %c0_97] : memref<1x8x8x128xf32, #tpu.memory_space<vmem>>, vector<1x8x8x128xf32>
    tpu.vector_store %arg8[%c0_94, %c0_95, %c0_96, %c0_97], %88 {strides = array<i32>} : memref<1x8x8x128xf32, #tpu.memory_space<vmem>>, vector<1x8x8x128xf32>,
    return
  }
  func.func @transform_0(%arg0: i32) -> (i32, i32, i32, i32) {
    %c0_i32 = arith.constant 0 : i32
    %c0_i32_0 = arith.constant 0 : i32
    %c0_i32_1 = arith.constant 0 : i32
    %c0_i32_2 = arith.constant 0 : i32
    return %arg0, %c0_i32, %c0_i32_0, %c0_i32_1 : i32, i32, i32, i32
  }
  func.func @transform_1(%arg0: i32) -> (i32, i32) {
    %c0_i32 = arith.constant 0 : i32
    %c0_i32_0 = arith.constant 0 : i32
    %c0_i32_1 = arith.constant 0 : i32
    return %c0_i32, %c0_i32_0 : i32, i32
  }
  func.func @transform_2(%arg0: i32) -> (i32, i32) {
    %c0_i32 = arith.constant 0 : i32
    %c0_i32_0 = arith.constant 0 : i32
    %c0_i32_1 = arith.constant 0 : i32
    return %c0_i32, %c0_i32_0 : i32, i32
  }
  func.func @transform_3(%arg0: i32) -> (i32, i32, i32, i32) {
    %c0_i32 = arith.constant 0 : i32
    %c0_i32_0 = arith.constant 0 : i32
    %c0_i32_1 = arith.constant 0 : i32
    %c0_i32_2 = arith.constant 0 : i32
    %c0_i32_3 = arith.constant 0 : i32
    return %c0_i32, %c0_i32_0, %c0_i32_1, %c0_i32_2 : i32, i32, i32, i32
  }
  func.func @transform_4(%arg0: i32) -> (i32, i32) {
    %c0_i32 = arith.constant 0 : i32
    %c0_i32_0 = arith.constant 0 : i32
    %c0_i32_1 = arith.constant 0 : i32
    return %c0_i32, %c0_i32_0 : i32, i32
  }
  func.func @transform_5(%arg0: i32) -> (i32, i32) {
    %c0_i32 = arith.constant 0 : i32
    %c0_i32_0 = arith.constant 0 : i32
    %c0_i32_1 = arith.constant 0 : i32
    return %c0_i32, %c0_i32_0 : i32, i32
  }
  func.func @transform_6(%arg0: i32) -> (i32, i32) {
    %c0_i32 = arith.constant 0 : i32
    %c0_i32_0 = arith.constant 0 : i32
    %c0_i32_1 = arith.constant 0 : i32
    return %c0_i32, %c0_i32_0 : i32, i32
  }
  func.func @transform_7(%arg0: i32) -> (i32, i32, i32, i32) {
    %c0_i32 = arith.constant 0 : i32
    %c0_i32_0 = arith.constant 0 : i32
    %c0_i32_1 = arith.constant 0 : i32
    %c0_i32_2 = arith.constant 0 : i32
    return %arg0, %c0_i32, %c0_i32_0, %c0_i32_1 : i32, i32, i32, i32
  }
}

</mosaic_0001>

<bundles_post_ra>
// kernel: tpu_custom_call.1
= control target key start
LH: loop header
LB: loop body
LE: loop exit
PB: predicated region body
PF: predicated region fallthrough
CT: control target
= control target key end

     0   :  { %s3920_s0 = inlined_call_operand.hbm [shape: f32[2,8,8,128], index: 0, kind: input, shape index: {}]   ;;  %s3921_s1 = inlined_call_operand.hbm [shape: f32[128,128], index: 1, kind: input, shape index: {}]   ;;  %s3922_s2 = inlined_call_operand.vmem [shape: f32[1,128], index: 2, kind: input, shape index: {}]   ;;  %s3923_s3 = inlined_call_operand.hbm [shape: f32[3,3,128,128], index: 3, kind: input, shape index: {}]   ;;  %s3924_s4 = inlined_call_operand.vmem [shape: f32[1,128], index: 4, kind: input, shape index: {}]   ;;  %s3925_s5 = inlined_call_operand.hbm [shape: f32[128,128], index: 5, kind: input, shape index: {}]   ;;  %s3926_s6 = inlined_call_operand.vmem [shape: f32[1,128], index: 6, kind: input, shape index: {}]   ;;  %s3927_s7 = inlined_call_operand.hbm [shape: f32[2,8,8,128], index: 7, kind: output, shape index: {}]  }
   0x1   :  { %3934 = sst [smem:[#allocation22_spill]] %s3921_s1 }
   0x2   :  { %12 = vsyncpa [#allocation4], 0 }
   0x3   :  { %14 = vsyncpa [#allocation4 + $0x1], 0 }
   0x4   :  { %15 = vsyncpa [#allocation7], 0 }
   0x5   :  { %16 = vsyncpa [#allocation10], 0 }
   0x6   :  { %17 = vsyncpa [#allocation5], 0 }
   0x7   :  { %19 = vsyncpa [#allocation5 + $0x1], 0  ;;  %s3376_s24 = smov 0   ;;  %s3378_s25 = smov 0  }
   0x8   :  { %s3380_s26 = smov 0   ;;  %s3382_s27 = smov 0  }
   0x9 LB: > { %s3397_s28 = sadd.s32 4294967295, %s3324_s27   ;;  %s2250_s29 = sadd.s32 4294967294, %s3324_s27   ;;  %s3324_s27 = sphi %s3382_s27, %s3968_s27   ;;  %s3320_s26 = sphi %s3380_s26, %s3967_s26   ;;  %s3316_s25 = sphi %s3378_s25, %s3966_s25   ;;  %s3312_s24 = sphi %s3376_s24, %s3965_s24  }
   0xa   : > { %p45_p0 = scmp.ne.s32.totalorder %s3316_s25, %s3312_s24  ;;  %p3928_p1 = scmp.eq.s32.totalorder %s3397_s28, 0 }
   0xb   : > { %p195_p2 = scmp.eq.s32.totalorder %s3397_s28, 1  ;;  %p201_p3 = scmp.eq.s32.totalorder %s2250_s29, 1 }
   0xc   : > { %p3406_p4 = por %p3928_p1, %p45_p0  ;;  %p2251_p5 = scmp.ge.s32.totalorder %s3324_s27, 1 }
   0xd   : > { %p3411_p6 = por %p201_p3, %p45_p0  ;;  %p208_p7 = scmp.lt.s32.totalorder %s3324_s27, 3 }
   0xe   : > { %s3935_s30 = scalar_select %p3406_p4, 1, 0 }
   0xf   : > { %s3936_s8 = scalar_select %p3411_p6, 1, 0 }
  0x10   : > { %p3416_p8 = pnand %p2251_p5, %p208_p7  ;;  %s3326_s10 = smov [#allocation6]  }
  0x11   : > { %s220_s11 = sshll.u32 %s3326_s10, 4  ;;  %s3327_s13 = smov [#allocation8]   ;;  %s221_s11 = int_to_ptr.vmem [resolvable:$true] %s220_s11 }
  0x12   : > { %s3937_s9 = scalar_select %p3416_p8, 1, 0 }
  0x13   : > { %p3071_p9 = pneg %p3416_p8  ;;  %s236_s14 = sshll.u32 %s3327_s13, 4  ;;  %s237_s14 = int_to_ptr.vmem [resolvable:$true] %s236_s14 }
  0x14   : > { %s3328_s15 = smov [#allocation9]   ;;  %s3157_s17 = scalar_lea.vmem %s221_s11, 2048 }
  0x15   : > { %p3425_p11 = pnand %p3071_p9, %p3928_p1  ;;  %s252_s16 = sshll.u32 %s3328_s15, 4  ;;  %s253_s16 = int_to_ptr.vmem [resolvable:$true] %s252_s16 }
  0x16   : > { %p3158_p13 = scmp.ne.s32.totalorder %s221_s11, %s3157_s17  ;;  %p3165_p5 = scmp.lt.s32.totalorder %s221_s11, %s221_s11 }
  0x17   : > { %p3148_p12 = pneg %p3425_p11  ;;  %p3166_p7 = scmp.lt.s32.totalorder %s3157_s17, %s3157_s17 }
  0x19   : > { %p3160_p0 = pnand %p3158_p13, %p3148_p12  ;;  %p3167_p9 = por %p3166_p7, %p3165_p5 }
  0x1b   : > { %p3161_p3 = pneg %p3160_p0 }
  0x1d   : > { %p3168_p10 = pnand %p3167_p9, %p3161_p3 }
  0x1f   : > { %3171 = shalt.err (!%p3168_p10)
}
  0x20   : > { %s3929_s18 = smov 128   ;;  %s3930_s19 = smov 8  }
  0x21   : > { %s3939_s1 = sld [smem:[#allocation22_spill]]  ;;  %s3183_s22 = scalar_lea.vmem %s237_s14, 18432 }
  0x22   : > { %p3184_p13 = scmp.ne.s32.totalorder %s237_s14, %s3183_s22  ;;  %p3191_p3 = scmp.lt.s32.totalorder %s237_s14, %s237_s14 }
  0x23   : > { %p3192_p10 = scmp.lt.s32.totalorder %s3183_s22, %s3183_s22 }
  0x24   : > { %p3186_p0 = pnand %p3184_p13, %p3148_p12 }
  0x25   : > { %p3193_p7 = por %p3192_p10, %p3191_p3 }
  0x26   : > { %p3187_p5 = pneg %p3186_p0 }
  0x27   : > { %3074 = dma.hbm_to_vmem [thread:$0]  (!%p3425_p11), %s3939_s1, 2048, %s221_s11, [#allocation7], %s3929_s18, %s3929_s18, %s3930_s19  }
  0x28   : > { %p3194_p9 = pnand %p3193_p7, %p3187_p5 }
  0x2a   : > { %3197 = shalt.err (!%p3194_p9)
}
  0x2b   : > { %3077 = dma.hbm_to_vmem [thread:$0]  (!%p3425_p11), %s3923_s3, 18432, %s237_s14, [#allocation7], %s3929_s18, %s3929_s18, %s3930_s19  }
  0x2c   : > { %s3209_s10 = scalar_lea.vmem %s253_s16, 2048  ;;  %p3217_p3 = scmp.lt.s32.totalorder %s253_s16, %s253_s16 }
  0x2d   : > { %p3210_p1 = scmp.ne.s32.totalorder %s253_s16, %s3209_s10  ;;  %p3218_p5 = scmp.lt.s32.totalorder %s3209_s10, %s3209_s10 }
  0x2f   : > { %p3212_p13 = pnand %p3210_p1, %p3148_p12  ;;  %p3219_p10 = por %p3218_p5, %p3217_p3 }
  0x31   : > { %p3213_p0 = pneg %p3212_p13 }
  0x33   : > { %p3220_p7 = pnand %p3219_p10, %p3213_p0 }
  0x35   : > { %3223 = shalt.err (!%p3220_p7)
}
  0x36   : > { %3080 = dma.hbm_to_vmem [thread:$0]  (!%p3425_p11), %s3925_s5, 2048, %s253_s16, [#allocation10], %s3929_s18, %s3929_s18, %s3930_s19  }
  0x37   : > { %s3465_s14 = sadd.s32 1, %s3324_s27   ;;  %s32_s15 = sadd.s32 1, %s3320_s26 }
  0x38   : > { %s29_s12 = ssub.s32 %s3324_s27, %s3465_s14  ;;  %p39_p12 = scmp.ne.s32.totalorder %s3320_s26, %s3316_s25 }
  0x39   : > { %p30_p1 = scmp.eq.s32.totalorder %s29_s12, 0  ;;  %p40_p9 = scmp.eq.s32.totalorder %s3324_s27, 0 }
  0x3a   : > { %p3092_p13 = scmp.lt.s32.totalorder %s3324_s27, 2  ;;  %p3479_p3 = por %p195_p2, %p39_p12 }
  0x3b   : > { %s3475_s17 = scalar_select %p30_p1, %s3320_s26, %s32_s15  }
  0x3c   : > { %p41_p0 = por %p40_p9, %p39_p12  ;;  %s269_s21 = sand.u32 1, %s3320_s26  }
  0x3d   : > { %s3940_s20 = scalar_select %p3479_p3, 1, 0 }
  0x3e   : > { %s2273_s22 = sshll.u32 %s3324_s27, 10  ;;  %s2256_s16 = sshll.u32 %s269_s21, 6 }
  0x3f   : > { %s3488_s10 = scalar_lea.hbm %s3920_s0, %s2273_s22  ;;  %s273_s11 = scalar_lea.vmem [#allocation3], %s2256_s16 }
  0x40   : > { %s280_s13 = sshll.u32 %s273_s11, 4  ;;  %p3490_p11 = pnand %p3092_p13, %p41_p0  ;;  %s3494_s13 = int_to_ptr.vmem [resolvable:$true] %s280_s13 }
  0x41   : > { %s3496_s15 = scalar_lea.sflag [#allocation4], %s269_s21  ;;  %s3224_s18 = scalar_lea.hbm %s3488_s10, 1024 }
  0x42   : > { %p3225_p2 = scmp.ne.s32.totalorder %s3488_s10, %s3224_s18  ;;  %p3226_p5 = pneg %p3490_p11 }
  0x43   : > { %s3229_s16 = scalar_lea.hbm %s3920_s0, 2048  ;;  %p3230_p1 = scmp.lt.s32.totalorder %s3488_s10, %s3920_s0 }
  0x44   : > { %p3227_p10 = pnand %p3226_p5, %p3225_p2  ;;  %p3231_p12 = scmp.lt.s32.totalorder %s3229_s16, %s3224_s18 }
  0x46   : > { %p3228_p7 = pneg %p3227_p10  ;;  %p3232_p9 = por %p3231_p12, %p3230_p1 }
  0x48   : > { %p3233_p13 = pnand %p3232_p9, %p3228_p7 }
  0x4a   : > { %3236 = shalt.err (!%p3233_p13)
}
  0x4b   : > { %s3237_s21 = scalar_lea.vmem %s3494_s13, 1024  ;;  %s3331_s19 = smov [#allocation3]  }
  0x4c   : > { %p3238_p0 = scmp.ne.s32.totalorder %s3494_s13, %s3237_s21  ;;  %s3242_s1 = sshll.u32 %s3331_s19, 4  ;;  %s3243_s1 = int_to_ptr.vmem [resolvable:$false] %s3242_s1 }
  0x4d   : > { %s3244_s22 = scalar_lea.vmem %s3243_s1, 2048  ;;  %p3245_p10 = scmp.lt.s32.totalorder %s3494_s13, %s3243_s1 }
  0x4e   : > { %p3240_p6 = pnand %p3238_p0, %p3226_p5  ;;  %p3246_p3 = scmp.lt.s32.totalorder %s3244_s22, %s3237_s21 }
  0x50   : > { %p3241_p2 = pneg %p3240_p6  ;;  %p3247_p4 = por %p3246_p3, %p3245_p10 }
  0x52   : > { %p3248_p8 = pnand %p3247_p4, %p3241_p2 }
  0x54   : > { %3251 = shalt.err (!%p3248_p8)
}
  0x55   : > { %s3942_s18 = smov 8   ;;  %s3943_s23 = smov 128  }
  0x56   : > { %3084 = dma.hbm_to_vmem [thread:$0]  (!%p3490_p11), %s3488_s10, 1024, %s3494_s13, %s3496_s15, %s3943_s23, %s3943_s23, %s3942_s18  }
  0x57   : > { %p3944_p6 = scmp.ne.s32.totalorder %s3937_s9, 0 }
  0x59   : > { %292 = sbr.rel (%p3944_p6) target bundleno = 927 (0x39f), region = 48 }
  0x5e   : > { %s3523_s19 = sand.u32 1, %s3316_s25   ;;  %p3945_p4 = scmp.ne.s32.totalorder %s3935_s30, 0 }
  0x5f   : > { %s2260_s1 = sshll.u32 %s3523_s19, 6  ;;  %s295_s16 = scalar_lea.sflag [#allocation4], %s3523_s19 }
  0x60   : > { %s3529_s12 = scalar_lea.vmem [#allocation3], %s2260_s1 }
  0x61   : > { %3295 = dma.done.wait (%p3945_p4), %s295_s16, 1024  }
  0x62   : > { %3297 = vsyncadd (%p3945_p4), %s295_s16, 4294966272  ;;  %p3946_p8 = scmp.eq.s32.totalorder %s3397_s28, 0 }
  0x64   : > { %3299 = dma.done.wait (%p3946_p8), [#allocation7], 20480   ;;  %p3947_p3 = pmov %p3946_p8 }
  0x66   : > { %3301 = vsyncadd (%p3947_p3), [#allocation7], 4294946816  ;;  %p3948_p11 = pmov %p3947_p3 }
  0x67   : > { %p3949_p5 = pmov %p3947_p3 }
  0x68   : > { %3303 = dma.done.wait (%p3948_p11), [#allocation10], 2048  }
  0x69   : > { %3305 = vsyncadd (%p3949_p5), [#allocation10], 4294965248  ;;  %v356_v0 = vld [vmem:[#allocation6 + $0x78] sm:$0xff]  ;;  %v355_v1 = vld [vmem:[#allocation6 + $0x70] sm:$0xff]  ;;  %v3332_v48 = vmov 0.0   ;;  %vm581_vm0 = vcmask 1046528  }
  0x6a   : > { %2539 = vmatprep.subr.mxu0 %v356_v0  ;;  %v354_v2 = vld [vmem:[#allocation6 + $0x68] sm:$0xff]  ;;  %v353_v3 = vld [vmem:[#allocation6 + $0x60] sm:$0xff]  ;;  %v352_v5 = vld [vmem:[#allocation6 + $0x58] sm:$0xff]  ;;  %503 = vst [vmem:[#allocation2] sm:$0xff] %v3332_v48  ;;  %v582_v57 = vrot.slane %v3332_v48, 1  ;;  %vm841_vm1 = vcmask 1045504  }
  0x6b   : > { %2540 = vmatpush3.msra.mxu0 %v356_v0  ;;  %v376_v4 = vld [vmem:[%s3529_s12] sm:$0xff]  ;;  %v351_v6 = vld [vmem:[#allocation6 + $0x50] sm:$0xff]  ;;  %v630_v7 = vld [vmem:[#allocation8 + $0xf8] sm:$0xff]  ;;  %504 = vst [vmem:[#allocation2 + $0x8] sm:$0x3] %v3332_v48  ;;  %s3854_s11 = scalar_lea.vmem [#allocation11], %s2260_s1 }
  0x6c   : > { %2541 = vmatprep.subr.mxu0 %v355_v1  ;;  %2571 = vmatprep.mubr.f32.mxu0 %v376_v4  ;;  %v629_v8 = vld [vmem:[#allocation8 + $0xf0] sm:$0xff]  ;;  %v350_v9 = vld [vmem:[#allocation6 + $0x48] sm:$0xff]  ;;  %v349_v11 = vld [vmem:[#allocation6 + $0x40] sm:$0xff]  ;;  %507 = vst [vmem:[#allocation2 + $0x98] sm:$0x3] %v3332_v48  ;;  %s2148_s21 = sshll.u32 %s3854_s11, 4  ;;  %s3868_s21 = int_to_ptr.vmem [resolvable:$true] %s2148_s21 }
  0x6d   : > { %2542 = vmatpush3.msra.mxu0 %v355_v1  ;;  %2583 = vmatprep.subr.mxu1 %v630_v7  ;;  %v628_v10 = vld [vmem:[#allocation8 + $0xe8] sm:$0xff]  ;;  %v627_v12 = vld [vmem:[#allocation8 + $0xe0] sm:$0xff]  ;;  %v348_v13 = vld [vmem:[#allocation6 + $0x38] sm:$0xff]  ;;  %509 = vst [vmem:[#allocation2 + $0x10] sm:$0x1] %v3332_v48  ;;  %s2274_s22 = sshll.u32 %s3397_s28, 10 }
  0x6e   : > { %2543 = vmatprep.subr.mxu0 %v354_v2  ;;  %2584 = vmatpush3.msra.mxu1 %v630_v7  ;;  %v626_v14 = vld [vmem:[#allocation8 + $0xd8] sm:$0xff]  ;;  %v347_v15 = vld [vmem:[#allocation6 + $0x30] sm:$0xff]  ;;  %v346_v17 = vld [vmem:[#allocation6 + $0x28] sm:$0xff]  ;;  %510 = vst [vmem:[#allocation2 + $0x20] sm:$0x1] %v3332_v48  ;;  %s3875_s1 = scalar_lea.hbm %s3927_s7, %s2274_s22  ;;  %s2135_s16 = scalar_lea.sflag [#allocation5], %s3523_s19 }
  0x6f   : > { %2544 = vmatpush3.msra.mxu0 %v354_v2  ;;  %2585 = vmatprep.subr.mxu1 %v629_v8  ;;  %v625_v16 = vld [vmem:[#allocation8 + $0xd0] sm:$0xff]  ;;  %v624_v18 = vld [vmem:[#allocation8 + $0xc8] sm:$0xff]  ;;  %v345_v19 = vld [vmem:[#allocation6 + $0x20] sm:$0xff]  ;;  %511 = vst [vmem:[#allocation2 + $0x30] sm:$0x1] %v3332_v48  ;;  %s3252_s30 = scalar_lea.vmem %s3868_s21, 1024 }
  0x70   : > { %2545 = vmatprep.subr.mxu0 %v353_v3  ;;  %2586 = vmatpush3.msra.mxu1 %v629_v8  ;;  %v623_v20 = vld [vmem:[#allocation8 + $0xc0] sm:$0xff]  ;;  %v344_v21 = vld [vmem:[#allocation6 + $0x18] sm:$0xff]  ;;  %v343_v22 = vld [vmem:[#allocation6 + $0x10] sm:$0xff]  ;;  %512 = vst [vmem:[#allocation2 + $0x40] sm:$0x1] %v3332_v48  ;;  %p3253_p7 = scmp.ne.s32.totalorder %s3868_s21, %s3252_s30  ;;  %p3962_p1 = scmp.ne.s32.totalorder %s3940_s20, 0 }
  0x71   : > { %2546 = vmatpush3.msra.mxu0 %v353_v3  ;;  %2587 = vmatprep.subr.mxu1 %v628_v10  ;;  %v342_v23 = vld [vmem:[#allocation6 + $0x8] sm:$0xff]  ;;  %v341_v24 = vld [vmem:[#allocation6] sm:$0xff]  ;;  %v564_v26 = vld [vmem:[#allocation8 + $0x78] sm:$0xff]  ;;  %513 = vst [vmem:[#allocation2 + $0x50] sm:$0x1] %v3332_v48  ;;  %s3333_s28 = smov [#allocation11]  }
  0x72   : > { %2547 = vmatprep.subr.mxu0 %v352_v5  ;;  %2588 = vmatpush3.msra.mxu1 %v628_v10  ;;  %v377_v25 = vld [vmem:[%s3529_s12 + $0x8] sm:$0xff]  ;;  %v378_v27 = vld [vmem:[%s3529_s12 + $0x10] sm:$0xff]  ;;  %v379_v29 = vld [vmem:[%s3529_s12 + $0x18] sm:$0xff]  ;;  %514 = vst [vmem:[#allocation2 + $0x60] sm:$0x1] %v3332_v48  ;;  %p3254_p12 = pnand %p3253_p7, %p3962_p1  ;;  %s3256_s9 = sshll.u32 %s3333_s28, 4  ;;  %s3257_s9 = int_to_ptr.vmem [resolvable:$false] %s3256_s9 }
  0x73   : > { %2548 = vmatpush3.msra.mxu0 %v352_v5  ;;  %2589 = vmatprep.subr.mxu1 %v627_v12  ;;  %v563_v28 = vld [vmem:[#allocation8 + $0x70] sm:$0xff]  ;;  %v562_v30 = vld [vmem:[#allocation8 + $0x68] sm:$0xff]  ;;  %v380_v31 = vld [vmem:[%s3529_s12 + $0x20] sm:$0xff]  ;;  %515 = vst [vmem:[#allocation2 + $0x70] sm:$0x1] %v3332_v48  ;;  %s3258_s10 = scalar_lea.vmem %s3257_s9, 2048  ;;  %p3259_p13 = scmp.lt.s32.totalorder %s3868_s21, %s3257_s9 }
  0x74   : > { %2549 = vmatprep.subr.mxu0 %v351_v6  ;;  %2590 = vmatpush3.msra.mxu1 %v627_v12  ;;  %v561_v32 = vld [vmem:[#allocation8 + $0x60] sm:$0xff]  ;;  %v381_v33 = vld [vmem:[%s3529_s12 + $0x28] sm:$0xff]  ;;  %v560_v34 = vld [vmem:[#allocation8 + $0x58] sm:$0xff]  ;;  %516 = vst [vmem:[#allocation2 + $0x80] sm:$0x1] %v3332_v48  ;;  %p3255_p9 = pneg %p3254_p12  ;;  %p3260_p0 = scmp.lt.s32.totalorder %s3258_s10, %s3252_s30 }
  0x75   : > { %2550 = vmatpush3.msra.mxu0 %v351_v6  ;;  %2591 = vmatprep.subr.mxu1 %v626_v14  ;;  %v382_v35 = vld [vmem:[%s3529_s12 + $0x30] sm:$0xff]  ;;  %v383_v37 = vld [vmem:[%s3529_s12 + $0x38] sm:$0xff]  ;;  %v558_v38 = vld [vmem:[#allocation8 + $0x48] sm:$0xff]  ;;  %517 = vst [vmem:[#allocation2 + $0x19] sm:$0x1] %v3332_v48 }
  0x76   : > { %2551 = vmatprep.subr.mxu0 %v350_v9  ;;  %2592 = vmatpush3.msra.mxu1 %v626_v14  ;;  %v559_v36 = vld [vmem:[#allocation8 + $0x50] sm:$0xff]  ;;  %v557_v39 = vld [vmem:[#allocation8 + $0x40] sm:$0xff]  ;;  %v556_v40 = vld [vmem:[#allocation8 + $0x38] sm:$0xff]  ;;  %518 = vst [vmem:[#allocation2 + $0x29] sm:$0x1] %v3332_v48  ;;  %p3261_p2 = por %p3260_p0, %p3259_p13 }
  0x77   : > { %2552 = vmatpush3.msra.mxu0 %v350_v9  ;;  %2593 = vmatprep.subr.mxu1 %v625_v16  ;;  %v555_v41 = vld [vmem:[#allocation8 + $0x30] sm:$0xff]  ;;  %v622_v42 = vld [vmem:[#allocation8 + $0xb8] sm:$0xff]  ;;  %v554_v43 = vld [vmem:[#allocation8 + $0x28] sm:$0xff]  ;;  %519 = vst [vmem:[#allocation2 + $0x39] sm:$0x1] %v3332_v48 }
  0x78   : > { %2553 = vmatprep.subr.mxu0 %v349_v11  ;;  %2594 = vmatpush3.msra.mxu1 %v625_v16  ;;  %v621_v44 = vld [vmem:[#allocation8 + $0xb0] sm:$0xff]  ;;  %v553_v45 = vld [vmem:[#allocation8 + $0x20] sm:$0xff]  ;;  %v620_v46 = vld [vmem:[#allocation8 + $0xa8] sm:$0xff]  ;;  %520 = vst [vmem:[#allocation2 + $0x49] sm:$0x1] %v3332_v48  ;;  %p3262_p10 = pnand %p3261_p2, %p3255_p9 }
  0x79   : > { %2554 = vmatpush3.msra.mxu0 %v349_v11  ;;  %2595 = vmatprep.subr.mxu1 %v624_v18  ;;  %v552_v47 = vld [vmem:[#allocation8 + $0x18] sm:$0xff]  ;;  %521 = vst [vmem:[#allocation2 + $0x59] sm:$0x1] %v3332_v48  ;;  %522 = vst [vmem:[#allocation2 + $0x69] sm:$0x1] %v3332_v48  ;;  %v619_v49 = vld [vmem:[#allocation8 + $0xa0] sm:$0xff] }
  0x7a   : > { %2555 = vmatprep.subr.mxu0 %v348_v13  ;;  %2596 = vmatpush3.msra.mxu1 %v624_v18  ;;  %523 = vst [vmem:[#allocation2 + $0x79] sm:$0x1] %v3332_v48  ;;  %524 = vst [vmem:[#allocation2 + $0x89] sm:$0x1] %v3332_v48  ;;  %v551_v50 = vld [vmem:[#allocation8 + $0x10] sm:$0xff]  ;;  %v618_v51 = vld [vmem:[#allocation8 + $0x98] sm:$0xff] }
  0x7b   : > { %2556 = vmatpush3.msra.mxu0 %v348_v13  ;;  %2597 = vmatprep.subr.mxu1 %v623_v20  ;;  %v550_v52 = vld [vmem:[#allocation8 + $0x8] sm:$0xff]  ;;  %v617_v53 = vld [vmem:[#allocation8 + $0x90] sm:$0xff]  ;;  %v549_v54 = vld [vmem:[#allocation8] sm:$0xff] }
  0x7c   : > { %2557 = vmatprep.subr.mxu0 %v347_v15  ;;  %2598 = vmatpush3.msra.mxu1 %v623_v20  ;;  %v616_v55 = vld [vmem:[#allocation8 + $0x88] sm:$0xff]  ;;  %v1036_v56 = vld [vmem:[#allocation8 + $0x1f8] sm:$0xff]  ;;  %v615_v58 = vld [vmem:[#allocation8 + $0x80] sm:$0xff] }
  0x7d   : > { %2558 = vmatpush3.msra.mxu0 %v347_v15  ;;  %2599 = vmatprep.subr.mxu1 %v622_v42  ;;  %v3572_v59 = vld [vmem:[#allocation2 + $0x8] sm:$0x3]  ;;  %v890_v62 = vld [vmem:[#allocation8 + $0x178] sm:$0xff]  ;;  %v2265_v63 = vld [vmem:[%s3922_s2] ss:$0 sm:$0xff] }
  0x7e   : > { %2559 = vmatprep.subr.mxu0 %v346_v17  ;;  %2600 = vmatpush3.msra.mxu1 %v622_v42  ;;  %v583_v60 = vrot.slane %v3572_v59, 1 }
  0x7f   : > { %2560 = vmatpush3.msra.mxu0 %v346_v17  ;;  %2601 = vmatprep.subr.mxu1 %v621_v44 }
  0x80   : > { %2561 = vmatprep.subr.mxu0 %v345_v19  ;;  %2602 = vmatpush3.msra.mxu1 %v621_v44  ;;  %v584_v61 = vsel %vm581_vm0, %v582_v57, %v583_v60  ;;  %v1031_v44 = vld [vmem:[#allocation8 + $0x1d0] sm:$0xff]  ;;  %v1028_v60 = vld [vmem:[#allocation8 + $0x1b8] sm:$0xff] }
  0x81   : > { %2562 = vmatpush3.msra.mxu0 %v345_v19  ;;  %2603 = vmatprep.subr.mxu1 %v620_v46 }
  0x82   : > { %2563 = vmatprep.subr.mxu0 %v344_v21  ;;  %2604 = vmatpush3.msra.mxu1 %v620_v46 }
  0x83   : > { %2564 = vmatpush3.msra.mxu0 %v344_v21  ;;  %2605 = vmatprep.subr.mxu1 %v619_v49 }
  0x84   : > { %2565 = vmatprep.subr.mxu0 %v343_v22  ;;  %2606 = vmatpush3.msra.mxu1 %v619_v49  ;;  %v1030_v49 = vld [vmem:[#allocation8 + $0x1c8] sm:$0xff] }
  0x85   : > { %2566 = vmatpush3.msra.mxu0 %v343_v22  ;;  %2607 = vmatprep.subr.mxu1 %v618_v51 }
  0x86   : > { %2567 = vmatprep.subr.mxu0 %v342_v23  ;;  %2608 = vmatpush3.msra.mxu1 %v618_v51  ;;  %v885_v51 = vld [vmem:[#allocation8 + $0x150] sm:$0xff] }
  0x87   : > { %2568 = vmatpush3.msra.mxu0 %v342_v23  ;;  %2609 = vmatprep.subr.mxu1 %v617_v53 }
  0x88   : > { %2569 = vmatprep.subr.mxu0 %v341_v24  ;;  %2610 = vmatpush3.msra.mxu1 %v617_v53 }
  0x89   : > { %2570 = vmatpush3.msra.mxu0 %v341_v24  ;;  %2611 = vmatprep.subr.mxu1 %v616_v55 }
  0x8a   : > { %2572 = vmatmul.mubr.f32.vlgmr.msra.gmra.mxu0 %v377_v25  ;;  %2627 = vmatprep.subr.mxu0 %v564_v26  ;;  %v1035_v25 = vld [vmem:[#allocation8 + $0x1f0] sm:$0xff] }
  0x8b   : > { %2574 = vmatprep.mubr.f32.mxu0 %v378_v27  ;;  %2628 = vmatpush3.msra.mxu0 %v564_v26 }
  0x8c   : > { %2629 = vmatprep.subr.mxu0 %v563_v28  ;;  %2612 = vmatpush3.msra.mxu1 %v616_v55  ;;  %v1029_v55 = vld [vmem:[#allocation8 + $0x1c0] sm:$0xff] }
  0x8d   : > { %2630 = vmatpush3.msra.mxu0 %v563_v28  ;;  %2613 = vmatprep.subr.mxu1 %v615_v58 }
  0x8e   : > { %2575 = vmatmul.mubr.f32.gmra.mxu0 %v379_v29  ;;  %2631 = vmatprep.subr.mxu0 %v562_v30 }
  0x8f   : > { %2577 = vmatprep.mubr.f32.mxu0 %v380_v31  ;;  %2632 = vmatpush3.msra.mxu0 %v562_v30 }
  0x90   : > { %2633 = vmatprep.subr.mxu0 %v561_v32  ;;  %2614 = vmatpush3.msra.mxu1 %v615_v58 }
  0x91   : > { %2634 = vmatpush3.msra.mxu0 %v561_v32  ;;  %2615 = vmatprep.mubr.f32.mxu1 %v584_v61  ;;  %v1034_v32 = vld [vmem:[#allocation8 + $0x1e8] sm:$0xff] }
  0x92   : > { %2578 = vmatmul.mubr.f32.gmra.mxu0 %v381_v33  ;;  %2635 = vmatprep.subr.mxu0 %v560_v34 }
  0x93   : > { %2580 = vmatprep.mubr.f32.mxu0 %v382_v35  ;;  %2636 = vmatpush3.msra.mxu0 %v560_v34 }
  0x94   : > { %2637 = vmatprep.subr.mxu0 %v559_v36  ;;  %2671 = vmatprep.subr.mxu1 %v890_v62 }
  0x95   : > { %2638 = vmatpush3.msra.mxu0 %v559_v36  ;;  %v889_v36 = vld [vmem:[#allocation8 + $0x170] sm:$0xff] }
  0x96   : > { %2581 = vmatmul.mubr.f32.gmra.mxu0 %v383_v37  ;;  %2639 = vmatprep.subr.mxu0 %v558_v38 }
  0x97   : > { %2640 = vmatpush3.msra.mxu0 %v558_v38  ;;  %2659 = vmatprep.mubr.f32.mxu0 %v3332_v48  ;;  %v1033_v38 = vld [vmem:[#allocation8 + $0x1e0] sm:$0xff] }
  0x98   : > { %2641 = vmatprep.subr.mxu0 %v557_v39 }
  0x99   : > { %2642 = vmatpush3.msra.mxu0 %v557_v39  ;;  %v888_v39 = vld [vmem:[#allocation8 + $0x168] sm:$0xff] }
  0x9a   : > { %2643 = vmatprep.subr.mxu0 %v556_v40 }
  0x9b   : > { %2644 = vmatpush3.msra.mxu0 %v556_v40 }
  0x9c   : > { %2645 = vmatprep.subr.mxu0 %v555_v41 }
  0x9d   : > { %2646 = vmatpush3.msra.mxu0 %v555_v41  ;;  %v1032_v41 = vld [vmem:[#allocation8 + $0x1d8] sm:$0xff] }
  0x9e   : > { %2647 = vmatprep.subr.mxu0 %v554_v43 }
  0x9f   : > { %2648 = vmatpush3.msra.mxu0 %v554_v43  ;;  %v887_v43 = vld [vmem:[#allocation8 + $0x160] sm:$0xff] }
  0xa0   : > { %2649 = vmatprep.subr.mxu0 %v553_v45 }
  0xa1   : > { %2650 = vmatpush3.msra.mxu0 %v553_v45  ;;  %v886_v45 = vld [vmem:[#allocation8 + $0x158] sm:$0xff] }
  0xa2   : > { %2651 = vmatprep.subr.mxu0 %v552_v47 }
  0xa3   : > { %2652 = vmatpush3.msra.mxu0 %v552_v47 }
  0xa4   : > { %2653 = vmatprep.subr.mxu0 %v551_v50 }
  0xa5   : > { %2654 = vmatpush3.msra.mxu0 %v551_v50 }
  0xa6   : > { %2655 = vmatprep.subr.mxu0 %v550_v52 }
  0xa7   : > { %2656 = vmatpush3.msra.mxu0 %v550_v52 }
  0xa8   : > { %2657 = vmatprep.subr.mxu0 %v549_v54 }
  0xa9   : > { %2658 = vmatpush3.msra.mxu0 %v549_v54 }
  0xaa   : > { %2715 = vmatprep.subr.mxu0 %v1036_v56 }
 0x14a   : > { %v2573_v0 = vpop.f32.mrf.mxu0 }
 0x14b   : > { %v462_v1 = vadd.f32 %v2573_v0, %v2265_v63 }
 0x14c   : > { %v456_v2 = vpop.f32.mrf.mxu0 }
 0x14d   : > { %v496_v3 = vmax.f32 %v462_v1, 0.0  ;;  %v457_v4 = vadd.f32 %v2265_v63, %v456_v2 }
 0x14e   : > { %v2576_v5 = vpop.f32.mrf.mxu0 }
 0x14f   : > { %526 = vst [vmem:[#allocation2 + $0x21] sm:$0xff] %v496_v3  ;;  %v495_v6 = vmax.f32 %v457_v4, 0.0  ;;  %v472_v7 = vadd.f32 %v2576_v5, %v2265_v63  ;;  %v1027_v3 = vld [vmem:[#allocation8 + $0x1b0] sm:$0xff]  ;;  %v882_v4 = vld [vmem:[#allocation8 + $0x138] sm:$0xff] }
 0x150   : > { %v466_v8 = vpop.f32.mrf.mxu0 }
 0x151   : > { %525 = vst [vmem:[#allocation2 + $0x11] sm:$0xff] %v495_v6  ;;  %v498_v9 = vmax.f32 %v472_v7, 0.0  ;;  %v467_v10 = vadd.f32 %v2265_v63, %v466_v8  ;;  %v1026_v8 = vld [vmem:[#allocation8 + $0x1a8] sm:$0xff] }
 0x152   : > { %v2579_v11 = vpop.f32.mrf.mxu0 }
 0x153   : > { %528 = vst [vmem:[#allocation2 + $0x41] sm:$0xff] %v498_v9  ;;  %v497_v12 = vmax.f32 %v467_v10, 0.0  ;;  %v482_v13 = vadd.f32 %v2579_v11, %v2265_v63  ;;  %v881_v11 = vld [vmem:[#allocation8 + $0x130] sm:$0xff] }
 0x154   : > { %v476_v14 = vpop.f32.mrf.mxu0 }
 0x155   : > { %527 = vst [vmem:[#allocation2 + $0x31] sm:$0xff] %v497_v12  ;;  %v500_v15 = vmax.f32 %v482_v13, 0.0  ;;  %v477_v16 = vadd.f32 %v2265_v63, %v476_v14  ;;  %v1025_v14 = vld [vmem:[#allocation8 + $0x1a0] sm:$0xff] }
 0x156   : > { %v2582_v17 = vpop.f32.mrf.mxu0  ;;  %v3579_v18 = vld [vmem:[#allocation2 + $0x20] sm:$0xff]  ;;  %v3581_v19 = vld [vmem:[#allocation2 + $0x28] sm:$0x3] }
 0x157   : > { %530 = vst [vmem:[#allocation2 + $0x61] sm:$0xff] %v500_v15  ;;  %v499_v20 = vmax.f32 %v477_v16, 0.0  ;;  %v492_v21 = vadd.f32 %v2582_v17, %v2265_v63  ;;  %v3586_v24 = vrot.slane %v3579_v18, 1  ;;  %v589_v30 = vrot.slane %v3581_v19, 1  ;;  %v880_v15 = vld [vmem:[#allocation8 + $0x128] sm:$0xff]  ;;  %v1024_v17 = vld [vmem:[#allocation8 + $0x198] sm:$0xff] }
 0x158   : > { %v486_v22 = vpop.f32.mrf.mxu0  ;;  %v3583_v23 = vld [vmem:[#allocation2 + $0x10] sm:$0xff]  ;;  %v3588_v26 = vld [vmem:[#allocation2 + $0x18] sm:$0x3] }
 0x159   : > { %529 = vst [vmem:[#allocation2 + $0x51] sm:$0xff] %v499_v20  ;;  %v502_v27 = vmax.f32 %v492_v21, 0.0  ;;  %v487_v28 = vadd.f32 %v2265_v63, %v486_v22  ;;  %2660 = vmatmul.mubr.f32.vlgmr.msra.gmra.mxu0 %v3583_v23  ;;  %v585_v29 = vrot.slane %v3583_v23, 1  ;;  %v586_v31 = vrot.slane %v3588_v26, 1  ;;  %v883_v63 = vld [vmem:[#allocation8 + $0x140] sm:$0xff]  ;;  %v1023_v22 = vld [vmem:[#allocation8 + $0x190] sm:$0xff] }
 0x15a   : > { %2716 = vmatpush3.msra.mxu0 %v1036_v56  ;;  %2662 = vmatprep.mubr.f32.mxu0 %v3579_v18  ;;  %v590_v37 = vsel %vm581_vm0, %v3586_v24, %v589_v30  ;;  %v3603_v40 = vld [vmem:[#allocation2 + $0x40] sm:$0xff]  ;;  %v3620_v54 = vld [vmem:[#allocation2 + $0x48] sm:$0x3] }
 0x15b   : > { %532 = vst [vmem:[#allocation2 + $0x81] sm:$0xff] %v502_v27  ;;  %v501_v33 = vmax.f32 %v487_v28, 0.0  ;;  %2717 = vmatprep.subr.mxu0 %v1035_v25  ;;  %v587_v34 = vsel %vm581_vm0, %v585_v29, %v586_v31  ;;  %v884_v56 = vld [vmem:[#allocation8 + $0x148] sm:$0xff]  ;;  %v3626_v58 = vrot.slane %v3603_v40, 1  ;;  %v595_v61 = vrot.slane %v3620_v54, 1  ;;  %v879_v21 = vld [vmem:[#allocation8 + $0x120] sm:$0xff] }
 0x15c   : > { %2718 = vmatpush3.msra.mxu0 %v1035_v25  ;;  %v3598_v35 = vld [vmem:[#allocation2 + $0x30] sm:$0xff]  ;;  %2616 = vmatmul.mubr.f32.vlgmr.msra.gmra.mxu1 %v587_v34  ;;  %v3611_v47 = vld [vmem:[#allocation2 + $0x38] sm:$0x3]  ;;  %v1022_v27 = vld [vmem:[#allocation8 + $0x188] sm:$0xff] }
 0x15d   : > { %531 = vst [vmem:[#allocation2 + $0x71] sm:$0xff] %v501_v33  ;;  %2719 = vmatprep.subr.mxu0 %v1034_v32  ;;  %2672 = vmatpush3.msra.mxu1 %v890_v62  ;;  %v3616_v52 = vrot.slane %v3598_v35, 1  ;;  %v592_v53 = vrot.slane %v3611_v47, 1  ;;  %v596_v5 = vsel %vm581_vm0, %v3626_v58, %v595_v61  ;;  %v878_v25 = vld [vmem:[#allocation8 + $0x118] sm:$0xff]  ;;  %v877_v28 = vld [vmem:[#allocation8 + $0x110] sm:$0xff]  ;;  %v1021_v30 = vld [vmem:[#allocation8 + $0x180] sm:$0xff] }
 0x15e   : > { %2618 = vmatprep.mubr.f32.mxu1 %v590_v37  ;;  %2663 = vmatmul.mubr.f32.gmra.mxu0 %v3598_v35  ;;  %v3609_v46 = vld [vmem:[#allocation2 + $0x60] sm:$0xff]  ;;  %v3636_v2 = vld [vmem:[#allocation2 + $0x68] sm:$0x3]  ;;  %v843_v33 = vrot.slane %v3572_v59, 2  ;;  %v1376_v34 = vld [vmem:[#allocation8 + $0x2f8] sm:$0xff]  ;;  %v845_v37 = vrot.slane %v3583_v23, 2 }
 0x15f   : > { %2673 = vmatprep.subr.mxu1 %v889_v36  ;;  %2720 = vmatpush3.msra.mxu0 %v1034_v32  ;;  %v593_v62 = vsel %vm581_vm0, %v3616_v52, %v592_v53  ;;  %v3643_v7 = vrot.slane %v3609_v46, 1  ;;  %v601_v9 = vrot.slane %v3636_v2, 1  ;;  %v876_v31 = vld [vmem:[#allocation8 + $0x108] sm:$0xff]  ;;  %v842_v32 = vrot.slane %v3332_v48, 2  ;;  %v1375_v59 = vld [vmem:[#allocation8 + $0x2f0] sm:$0xff] }
 0x160   : > { %2674 = vmatpush3.msra.mxu1 %v889_v36  ;;  %2721 = vmatprep.subr.mxu0 %v1033_v38  ;;  %v3605_v42 = vld [vmem:[#allocation2 + $0x50] sm:$0xff]  ;;  %v3623_v57 = vld [vmem:[#allocation2 + $0x58] sm:$0x3]  ;;  %v875_v36 = vld [vmem:[#allocation8 + $0x100] sm:$0xff]  ;;  %v3677_v53 = vrot.slane %v3603_v40, 2 }
 0x161   : > { %2675 = vmatprep.subr.mxu1 %v888_v39  ;;  %2722 = vmatpush3.msra.mxu0 %v1033_v38  ;;  %v3633_v0 = vrot.slane %v3605_v42, 1  ;;  %v598_v1 = vrot.slane %v3623_v57, 1  ;;  %v602_v16 = vsel %vm581_vm0, %v3643_v7, %v601_v9  ;;  %v846_v38 = vrot.slane %v3588_v26, 2  ;;  %v1210_v9 = vld [vmem:[#allocation8 + $0x258] sm:$0xff] }
 0x162   : > { %2665 = vmatprep.mubr.f32.mxu0 %v3603_v40  ;;  %2676 = vmatpush3.msra.mxu1 %v888_v39  ;;  %v3661_v39 = vrot.slane %v3579_v18, 2  ;;  %v844_v48 = vsel %vm841_vm1, %v842_v32, %v843_v33  ;;  %v1366_v32 = vld [vmem:[#allocation8 + $0x2a8] sm:$0xff]  ;;  %v1205_v33 = vld [vmem:[#allocation8 + $0x230] sm:$0xff] }
 0x163   : > { %2723 = vmatprep.subr.mxu0 %v1032_v41  ;;  %2666 = vmatmul.mubr.f32.gmra.mxu0 %v3605_v42  ;;  %v599_v10 = vsel %vm581_vm0, %v3633_v0, %v598_v1  ;;  %v847_v26 = vsel %vm841_vm1, %v845_v37, %v846_v38  ;;  %v858_v1 = vrot.slane %v3623_v57, 2  ;;  %v1202_v38 = vld [vmem:[#allocation8 + $0x218] sm:$0xff] }
 0x164   : > { %2677 = vmatprep.subr.mxu1 %v887_v43  ;;  %2724 = vmatpush3.msra.mxu0 %v1032_v41  ;;  %v3613_v50 = vld [vmem:[#allocation2 + $0x70] sm:$0xff]  ;;  %v3640_v6 = vld [vmem:[#allocation2 + $0x78] sm:$0x3]  ;;  %v849_v41 = vrot.slane %v3581_v19, 2  ;;  %v3673_v19 = vrot.slane %v3598_v35, 2 }
 0x165   : > { %2678 = vmatpush3.msra.mxu1 %v887_v43  ;;  %2725 = vmatprep.subr.mxu0 %v1031_v44  ;;  %v3649_v12 = vrot.slane %v3613_v50, 1  ;;  %v604_v13 = vrot.slane %v3640_v6, 1  ;;  %v1214_v43 = vld [vmem:[#allocation8 + $0x278] sm:$0xff] }
 0x166   : > { %2679 = vmatprep.subr.mxu1 %v886_v45  ;;  %2726 = vmatpush3.msra.mxu0 %v1031_v44  ;;  %v850_v44 = vsel %vm841_vm1, %v3661_v39, %v849_v41  ;;  %v1201_v41 = vld [vmem:[#allocation8 + $0x210] sm:$0xff] }
 0x167   : > { %2668 = vmatprep.mubr.f32.mxu0 %v3609_v46  ;;  %2680 = vmatpush3.msra.mxu1 %v886_v45  ;;  %v605_v20 = vsel %vm581_vm0, %v3649_v12, %v604_v13  ;;  %v1374_v45 = vld [vmem:[#allocation8 + $0x2e8] sm:$0xff] }
 0x168   : > { %2727 = vmatprep.subr.mxu0 %v1030_v49  ;;  %2669 = vmatmul.mubr.f32.gmra.mxu0 %v3613_v50  ;;  %v1370_v13 = vld [vmem:[#allocation8 + $0x2c8] sm:$0xff] }
 0x169   : > { %2681 = vmatprep.subr.mxu1 %v885_v51  ;;  %2728 = vmatpush3.msra.mxu0 %v1030_v49  ;;  %v1213_v49 = vld [vmem:[#allocation8 + $0x270] sm:$0xff] }
 0x16a   : > { %2682 = vmatpush3.msra.mxu1 %v885_v51  ;;  %2729 = vmatprep.subr.mxu0 %v1029_v55  ;;  %v852_v51 = vrot.slane %v3611_v47, 2 }
 0x16b   : > { %2747 = vmatprep.mubr.f32.mxu0 %v3583_v23  ;;  %2683 = vmatprep.subr.mxu1 %v884_v56  ;;  %v1364_v23 = vld [vmem:[#allocation8 + $0x298] sm:$0xff] }
 0x16c   : > { %2730 = vmatpush3.msra.mxu0 %v1029_v55  ;;  %2684 = vmatpush3.msra.mxu1 %v884_v56  ;;  %v1373_v55 = vld [vmem:[#allocation8 + $0x2e0] sm:$0xff]  ;;  %v855_v56 = vrot.slane %v3620_v54, 2  ;;  %v853_v47 = vsel %vm841_vm1, %v3673_v19, %v852_v51  ;;  %v1701_v51 = vld [vmem:[#allocation8 + $0x3f8] sm:$0xff] }
 0x16d   : > { %2731 = vmatprep.subr.mxu0 %v1028_v60  ;;  %2619 = vmatmul.mubr.f32.gmra.mxu1 %v593_v62  ;;  %v1372_v62 = vld [vmem:[#allocation8 + $0x2d8] sm:$0xff]  ;;  %v1211_v54 = vld [vmem:[#allocation8 + $0x260] sm:$0xff] }
 0x16e   : > { %2685 = vmatprep.subr.mxu1 %v883_v63  ;;  %2732 = vmatpush3.msra.mxu0 %v1028_v60  ;;  %v1212_v60 = vld [vmem:[#allocation8 + $0x268] sm:$0xff]  ;;  %v856_v61 = vsel %vm841_vm1, %v3677_v53, %v855_v56 }
 0x16f   : > { %2686 = vmatpush3.msra.mxu1 %v883_v63  ;;  %2733 = vmatprep.subr.mxu0 %v1027_v3  ;;  %v3687_v63 = vrot.slane %v3605_v42, 2  ;;  %v1011_v56 = vld [vmem:[#allocation2 + $0x48] sm:$0x3] }
 0x170   : > { %2687 = vmatprep.subr.mxu1 %v882_v4  ;;  %2734 = vmatpush3.msra.mxu0 %v1027_v3  ;;  %v3691_v3 = vrot.slane %v3609_v46, 2 }
 0x171   : > { %2621 = vmatprep.mubr.f32.mxu1 %v596_v5  ;;  %2688 = vmatpush3.msra.mxu1 %v882_v4  ;;  %v1371_v4 = vld [vmem:[#allocation8 + $0x2d0] sm:$0xff]  ;;  %v861_v5 = vrot.slane %v3636_v2, 2  ;;  %v859_v57 = vsel %vm841_vm1, %v3687_v63, %v858_v1 }
 0x172   : > { %2735 = vmatprep.subr.mxu0 %v1026_v8  ;;  %2622 = vmatmul.mubr.f32.gmra.mxu1 %v599_v10  ;;  %v1209_v2 = vld [vmem:[#allocation8 + $0x250] sm:$0xff] }
 0x173   : > { %2689 = vmatprep.subr.mxu1 %v881_v11  ;;  %2736 = vmatpush3.msra.mxu0 %v1026_v8  ;;  %v1005_v8 = vld [vmem:[#allocation2 + $0x18] sm:$0x3] }
 0x174   : > { %2690 = vmatpush3.msra.mxu1 %v881_v11  ;;  %2737 = vmatprep.subr.mxu0 %v1025_v14  ;;  %v1329_v10 = vrot.slane %v1005_v8, 2  ;;  %v862_v11 = vsel %vm841_vm1, %v3691_v3, %v861_v5  ;;  %v1338_v5 = vrot.slane %v1011_v56, 2 }
 0x175   : > { %2691 = vmatprep.subr.mxu1 %v880_v15  ;;  %2738 = vmatpush3.msra.mxu0 %v1025_v14  ;;  %v3701_v14 = vrot.slane %v3613_v50, 2 }
 0x176   : > { %2624 = vmatprep.mubr.f32.mxu1 %v602_v16  ;;  %2692 = vmatpush3.msra.mxu1 %v880_v15  ;;  %v3703_v15 = vld [vmem:[#allocation2 + $0x80] sm:$0xff]  ;;  %v864_v16 = vrot.slane %v3640_v6, 2  ;;  %v1368_v6 = vld [vmem:[#allocation8 + $0x2b8] sm:$0xff] }
 0x177   : > { %2739 = vmatprep.subr.mxu0 %v1024_v17  ;;  %2625 = vmatmul.mubr.f32.gmra.mxu1 %v605_v20  ;;  %v1330_v20 = vsel %vm841_vm1, %v845_v37, %v1329_v10  ;;  %v1363_v37 = vld [vmem:[#allocation8 + $0x290] sm:$0xff]  ;;  %v1699_v10 = vld [vmem:[#allocation8 + $0x3e8] sm:$0xff] }
 0x178   : > { %2693 = vmatprep.subr.mxu1 %v879_v21  ;;  %2740 = vmatpush3.msra.mxu0 %v1024_v17  ;;  %v1369_v17 = vld [vmem:[#allocation8 + $0x2c0] sm:$0xff] }
 0x179   : > { %2694 = vmatpush3.msra.mxu1 %v879_v21  ;;  %2741 = vmatprep.subr.mxu0 %v1023_v22  ;;  %v1208_v21 = vld [vmem:[#allocation8 + $0x248] sm:$0xff] }
 0x17a   : > { %2695 = vmatprep.subr.mxu1 %v878_v25  ;;  %2742 = vmatpush3.msra.mxu0 %v1023_v22  ;;  %v1167_v22 = vrot.slane %v1005_v8, 1 }
 0x17b   : > { %2696 = vmatpush3.msra.mxu1 %v878_v25  ;;  %2743 = vmatprep.subr.mxu0 %v1022_v27  ;;  %v865_v25 = vsel %vm841_vm1, %v3701_v14, %v864_v16  ;;  %v1176_v16 = vrot.slane %v1011_v56, 1 }
 0x17c   : > { %2697 = vmatprep.subr.mxu1 %v877_v28  ;;  %2744 = vmatpush3.msra.mxu0 %v1022_v27  ;;  %v1207_v27 = vld [vmem:[#allocation8 + $0x240] sm:$0xff] }
 0x17d   : > { %2698 = vmatpush3.msra.mxu1 %v877_v28  ;;  %2745 = vmatprep.subr.mxu0 %v1021_v30  ;;  %v1168_v28 = vsel %vm581_vm0, %v585_v29, %v1167_v22  ;;  %v1203_v29 = vld [vmem:[#allocation8 + $0x220] sm:$0xff] }
 0x17e   : > { %2699 = vmatprep.subr.mxu1 %v876_v31  ;;  %2746 = vmatpush3.msra.mxu0 %v1021_v30  ;;  %v1367_v30 = vld [vmem:[#allocation8 + $0x2b0] sm:$0xff] }
 0x17f   : > { %2700 = vmatpush3.msra.mxu1 %v876_v31  ;;  %2748 = vmatmul.mubr.f32.vlgmr.msra.gmra.mxu0 %v3579_v18  ;;  %v1206_v31 = vld [vmem:[#allocation8 + $0x238] sm:$0xff] }
 0x180   : > { %2803 = vmatprep.subr.mxu0 %v1376_v34  ;;  %2701 = vmatprep.subr.mxu1 %v875_v36 }
 0x181   : > { %2750 = vmatprep.mubr.f32.mxu0 %v3598_v35  ;;  %2804 = vmatpush3.msra.mxu0 %v1376_v34  ;;  %v1365_v34 = vld [vmem:[#allocation8 + $0x2a0] sm:$0xff] }
 0x182   : > { %2702 = vmatpush3.msra.mxu1 %v875_v36  ;;  %2703 = vmatprep.mubr.f32.mxu1 %v844_v48  ;;  %v1204_v36 = vld [vmem:[#allocation8 + $0x228] sm:$0xff] }
 0x183   : > { %2805 = vmatprep.subr.mxu0 %v1375_v59  ;;  %2704 = vmatmul.mubr.f32.vlgmr.msra.gmra.mxu1 %v847_v26  ;;  %v1007_v48 = vld [vmem:[#allocation2 + $0x28] sm:$0x3]  ;;  %v1361_v26 = vld [vmem:[#allocation8 + $0x280] sm:$0xff] }
 0x184   : > { %2759 = vmatprep.subr.mxu1 %v1214_v43  ;;  %2806 = vmatpush3.msra.mxu0 %v1375_v59  ;;  %v1362_v59 = vld [vmem:[#allocation8 + $0x288] sm:$0xff] }
 0x185   : > { %2706 = vmatprep.mubr.f32.mxu1 %v850_v44  ;;  %2751 = vmatmul.mubr.f32.gmra.mxu0 %v3603_v40  ;;  %v1332_v44 = vrot.slane %v1007_v48, 2 }
 0x186   : > { %2760 = vmatpush3.msra.mxu1 %v1214_v43  ;;  %2807 = vmatprep.subr.mxu0 %v1374_v45  ;;  %v1009_v43 = vld [vmem:[#allocation2 + $0x38] sm:$0x3] }
 0x187   : > { %2753 = vmatprep.mubr.f32.mxu0 %v3605_v42  ;;  %2761 = vmatprep.subr.mxu1 %v1213_v49 }
 0x188   : > { %2808 = vmatpush3.msra.mxu0 %v1374_v45  ;;  %2762 = vmatpush3.msra.mxu1 %v1213_v49  ;;  %v1200_v45 = vld [vmem:[#allocation8 + $0x208] sm:$0xff]  ;;  %v1335_v49 = vrot.slane %v1009_v43, 2 }
 0x189   : > { %2809 = vmatprep.subr.mxu0 %v1373_v55  ;;  %2707 = vmatmul.mubr.f32.gmra.mxu1 %v853_v47  ;;  %v1170_v47 = vrot.slane %v1007_v48, 1  ;;  %v1349_v48 = vrot.slane %v3703_v15, 2 }
 0x18a   : > { %2763 = vmatprep.subr.mxu1 %v1212_v60  ;;  %2810 = vmatpush3.msra.mxu0 %v1373_v55  ;;  %v1199_v55 = vld [vmem:[#allocation8 + $0x200] sm:$0xff]  ;;  %v1336_v1 = vsel %vm841_vm1, %v3673_v19, %v1335_v49  ;;  %v1518_v49 = vld [vmem:[#allocation8 + $0x350] sm:$0xff] }
 0x18b   : > { %2709 = vmatprep.mubr.f32.mxu1 %v856_v61  ;;  %2754 = vmatmul.mubr.f32.gmra.mxu0 %v3609_v46  ;;  %v1013_v61 = vld [vmem:[#allocation2 + $0x58] sm:$0x3] }
 0x18c   : > { %2764 = vmatpush3.msra.mxu1 %v1212_v60  ;;  %2811 = vmatprep.subr.mxu0 %v1372_v62  ;;  %v1333_v60 = vsel %vm841_vm1, %v3661_v39, %v1332_v44  ;;  %v1341_v8 = vrot.slane %v1013_v61, 2  ;;  %v1179_v22 = vrot.slane %v1013_v61, 1  ;;  %v1517_v61 = vld [vmem:[#allocation8 + $0x348] sm:$0xff] }
 0x18d   : > { %2756 = vmatprep.mubr.f32.mxu0 %v3613_v50  ;;  %2765 = vmatprep.subr.mxu1 %v1211_v54 }
 0x18e   : > { %2812 = vmatpush3.msra.mxu0 %v1372_v62  ;;  %2766 = vmatpush3.msra.mxu1 %v1211_v54  ;;  %v1700_v62 = vld [vmem:[#allocation8 + $0x3f0] sm:$0xff]  ;;  %v1173_v54 = vrot.slane %v1009_v43, 1 }
 0x18f   : > { %2813 = vmatprep.subr.mxu0 %v1371_v4  ;;  %2710 = vmatmul.mubr.f32.gmra.mxu1 %v859_v57 }
 0x190   : > { %2767 = vmatprep.subr.mxu1 %v1210_v9  ;;  %2814 = vmatpush3.msra.mxu0 %v1371_v4  ;;  %v1523_v4 = vld [vmem:[#allocation8 + $0x378] sm:$0xff]  ;;  %v1174_v57 = vsel %vm581_vm0, %v3616_v52, %v1173_v54 }
 0x191   : > { %2712 = vmatprep.mubr.f32.mxu1 %v862_v11  ;;  %2757 = vmatmul.mubr.f32.gmra.mxu0 %v3703_v15  ;;  %v1015_v11 = vld [vmem:[#allocation2 + $0x68] sm:$0x3]  ;;  %v1693_v54 = vld [vmem:[#allocation8 + $0x3b8] sm:$0xff] }
 0x192   : > { %2768 = vmatpush3.msra.mxu1 %v1210_v9  ;;  %2815 = vmatprep.subr.mxu0 %v1370_v13  ;;  %v1171_v9 = vsel %vm581_vm0, %v3586_v24, %v1170_v47 }
 0x193   : > { %2769 = vmatprep.subr.mxu1 %v1209_v2  ;;  %2816 = vmatpush3.msra.mxu0 %v1370_v13  ;;  %v1339_v13 = vsel %vm841_vm1, %v3677_v53, %v1338_v5  ;;  %v1691_v5 = vld [vmem:[#allocation8 + $0x3a8] sm:$0xff] }
 0x194   : > { %2835 = vmatprep.mubr.f32.mxu0 %v1330_v20  ;;  %2770 = vmatpush3.msra.mxu1 %v1209_v2  ;;  %v1522_v2 = vld [vmem:[#allocation8 + $0x370] sm:$0xff]  ;;  %v1342_v20 = vsel %vm841_vm1, %v3687_v63, %v1341_v8 }
 0x195   : > { %2817 = vmatprep.subr.mxu0 %v1369_v17  ;;  %2713 = vmatmul.mubr.f32.gmra.mxu1 %v865_v25  ;;  %v1521_v25 = vld [vmem:[#allocation8 + $0x368] sm:$0xff]  ;;  %v1514_v8 = vld [vmem:[#allocation8 + $0x330] sm:$0xff] }
 0x196   : > { %2771 = vmatprep.subr.mxu1 %v1208_v21  ;;  %2818 = vmatpush3.msra.mxu0 %v1369_v17  ;;  %v1017_v17 = vld [vmem:[#allocation2 + $0x78] sm:$0x3] }
 0x197   : > { %2772 = vmatpush3.msra.mxu1 %v1208_v21  ;;  %2791 = vmatprep.mubr.f32.mxu1 %v1168_v28  ;;  %v1698_v21 = vld [vmem:[#allocation8 + $0x3e0] sm:$0xff]  ;;  %v1177_v28 = vsel %vm581_vm0, %v3626_v58, %v1176_v16  ;;  %v1687_v16 = vld [vmem:[#allocation8 + $0x388] sm:$0xff] }
 0x198   : > { %2819 = vmatprep.subr.mxu0 %v1368_v6  ;;  %2773 = vmatprep.subr.mxu1 %v1207_v27 }
 0x199   : > { %2820 = vmatpush3.msra.mxu0 %v1368_v6  ;;  %2774 = vmatpush3.msra.mxu1 %v1207_v27  ;;  %v1344_v6 = vrot.slane %v1015_v11, 2  ;;  %v1347_v27 = vrot.slane %v1017_v17, 2 }
 0x19a   : > { %2821 = vmatprep.subr.mxu0 %v1367_v30  ;;  %2775 = vmatprep.subr.mxu1 %v1206_v31 }
 0x19b   : > { %2822 = vmatpush3.msra.mxu0 %v1367_v30  ;;  %2776 = vmatpush3.msra.mxu1 %v1206_v31  ;;  %v1180_v30 = vsel %vm581_vm0, %v3633_v0, %v1179_v22  ;;  %v1697_v31 = vld [vmem:[#allocation8 + $0x3d8] sm:$0xff] }
 0x19c   : > { %2823 = vmatprep.subr.mxu0 %v1366_v32  ;;  %2777 = vmatprep.subr.mxu1 %v1205_v33 }
 0x19d   : > { %2824 = vmatpush3.msra.mxu0 %v1366_v32  ;;  %2778 = vmatpush3.msra.mxu1 %v1205_v33  ;;  %v1019_v32 = vld [vmem:[#allocation2 + $0x88] sm:$0x3]  ;;  %v1345_v33 = vsel %vm841_vm1, %v3691_v3, %v1344_v6 }
 0x19e   : > { %2825 = vmatprep.subr.mxu0 %v1365_v34  ;;  %2779 = vmatprep.subr.mxu1 %v1204_v36  ;;  %v1188_v56 = vrot.slane %v1019_v32, 1 }
 0x19f   : > { %2826 = vmatpush3.msra.mxu0 %v1365_v34  ;;  %2780 = vmatpush3.msra.mxu1 %v1204_v36  ;;  %v1520_v34 = vld [vmem:[#allocation8 + $0x360] sm:$0xff]  ;;  %v1182_v36 = vrot.slane %v1015_v11, 1  ;;  %v1688_v11 = vld [vmem:[#allocation8 + $0x390] sm:$0xff] }
 0x1a0   : > { %2827 = vmatprep.subr.mxu0 %v1364_v23  ;;  %2781 = vmatprep.subr.mxu1 %v1203_v29 }
 0x1a1   : > { %2828 = vmatpush3.msra.mxu0 %v1364_v23  ;;  %2782 = vmatpush3.msra.mxu1 %v1203_v29  ;;  %v1348_v23 = vsel %vm841_vm1, %v3701_v14, %v1347_v27  ;;  %v1696_v29 = vld [vmem:[#allocation8 + $0x3d0] sm:$0xff]  ;;  %v1183_v43 = vsel %vm581_vm0, %v3643_v7, %v1182_v36  ;;  %v3759_v27 = vld [vmem:[#allocation2 + $0x58] sm:$0x3] }
 0x1a2   : > { %2829 = vmatprep.subr.mxu0 %v1363_v37  ;;  %2783 = vmatprep.subr.mxu1 %v1202_v38 }
 0x1a3   : > { %2830 = vmatpush3.msra.mxu0 %v1363_v37  ;;  %2784 = vmatpush3.msra.mxu1 %v1202_v38  ;;  %v1185_v37 = vrot.slane %v1017_v17, 1  ;;  %v3735_v38 = vld [vmem:[#allocation2 + $0x28] sm:$0x3] }
 0x1a4   : > { %2831 = vmatprep.subr.mxu0 %v1362_v59  ;;  %2785 = vmatprep.subr.mxu1 %v1201_v41  ;;  %v3755_v17 = vld [vmem:[#allocation2 + $0x48] sm:$0x3] }
 0x1a5   : > { %2832 = vmatpush3.msra.mxu0 %v1362_v59  ;;  %2786 = vmatpush3.msra.mxu1 %v1201_v41  ;;  %v1519_v59 = vld [vmem:[#allocation8 + $0x358] sm:$0xff]  ;;  %v1350_v41 = vrot.slane %v1019_v32, 2  ;;  %v1186_v44 = vsel %vm581_vm0, %v3649_v12, %v1185_v37  ;;  %v1660_v6 = vrot.slane %v3755_v17, 1  ;;  %v1663_v32 = vrot.slane %v3759_v27, 1  ;;  %v1862_v37 = vld [vmem:[#allocation8 + $0x470] sm:$0xff] }
 0x1a6   : > { %2833 = vmatprep.subr.mxu0 %v1361_v26  ;;  %2787 = vmatprep.subr.mxu1 %v1200_v45 }
 0x1a7   : > { %2834 = vmatpush3.msra.mxu0 %v1361_v26  ;;  %2788 = vmatpush3.msra.mxu1 %v1200_v45  ;;  %v1654_v26 = vrot.slane %v3735_v38, 1  ;;  %v1695_v45 = vld [vmem:[#allocation8 + $0x3c8] sm:$0xff] }
 0x1a8   : > { %2836 = vmatmul.mubr.f32.vlgmr.msra.gmra.mxu0 %v1333_v60  ;;  %2891 = vmatprep.subr.mxu0 %v1701_v51  ;;  %v1694_v60 = vld [vmem:[#allocation8 + $0x3c0] sm:$0xff] }
 0x1a9   : > { %2789 = vmatprep.subr.mxu1 %v1199_v55  ;;  %2838 = vmatprep.mubr.f32.mxu0 %v1336_v1  ;;  %v1655_v47 = vsel %vm581_vm0, %v3586_v24, %v1654_v26  ;;  %v1516_v1 = vld [vmem:[#allocation8 + $0x340] sm:$0xff]  ;;  %v1515_v24 = vld [vmem:[#allocation8 + $0x338] sm:$0xff] }
 0x1aa   : > { %2892 = vmatpush3.msra.mxu0 %v1701_v51  ;;  %2790 = vmatpush3.msra.mxu1 %v1199_v55  ;;  %v1187_v51 = vrot.slane %v3703_v15, 1  ;;  %v1351_v55 = vsel %vm841_vm1, %v1349_v48, %v1350_v41  ;;  %v1861_v41 = vld [vmem:[#allocation8 + $0x468] sm:$0xff]  ;;  %v3781_v26 = vld [vmem:[#allocation2 + $0x98] sm:$0x3] }
 0x1ab   : > { %2893 = vmatprep.subr.mxu0 %v1700_v62  ;;  %2792 = vmatmul.mubr.f32.vlgmr.msra.gmra.mxu1 %v1171_v9  ;;  %v1690_v9 = vld [vmem:[#allocation8 + $0x3a0] sm:$0xff] }
 0x1ac   : > { %2847 = vmatprep.subr.mxu1 %v1523_v4  ;;  %2894 = vmatpush3.msra.mxu0 %v1700_v62  ;;  %v1189_v62 = vsel %vm581_vm0, %v1187_v51, %v1188_v56 }
 0x1ad   : > { %2794 = vmatprep.mubr.f32.mxu1 %v1174_v57  ;;  %2839 = vmatmul.mubr.f32.gmra.mxu0 %v1339_v13  ;;  %v1513_v57 = vld [vmem:[#allocation8 + $0x328] sm:$0xff]  ;;  %v1511_v13 = vld [vmem:[#allocation8 + $0x318] sm:$0xff] }
 0x1ae   : > { %2848 = vmatpush3.msra.mxu1 %v1523_v4  ;;  %2895 = vmatprep.subr.mxu0 %v1699_v10  ;;  %v1692_v4 = vld [vmem:[#allocation8 + $0x3b0] sm:$0xff] }
 0x1af   : > { %2841 = vmatprep.mubr.f32.mxu0 %v1342_v20  ;;  %2849 = vmatprep.subr.mxu1 %v1522_v2  ;;  %v1510_v20 = vld [vmem:[#allocation8 + $0x310] sm:$0xff] }
 0x1b0   : > { %2896 = vmatpush3.msra.mxu0 %v1699_v10  ;;  %2850 = vmatpush3.msra.mxu1 %v1522_v2  ;;  %v1689_v10 = vld [vmem:[#allocation8 + $0x398] sm:$0xff] }
 0x1b1   : > { %2897 = vmatprep.subr.mxu0 %v1698_v21  ;;  %2795 = vmatmul.mubr.f32.gmra.mxu1 %v1177_v28  ;;  %v3753_v2 = vld [vmem:[#allocation2 + $0x38] sm:$0x3]  ;;  %v3761_v28 = vld [vmem:[#allocation2 + $0x68] sm:$0x3] }
 0x1b2   : > { %2851 = vmatprep.subr.mxu1 %v1521_v25  ;;  %2898 = vmatpush3.msra.mxu0 %v1698_v21  ;;  %v1686_v21 = vld [vmem:[#allocation8 + $0x380] sm:$0xff]  ;;  %v1657_v22 = vrot.slane %v3753_v2, 1  ;;  %v1666_v36 = vrot.slane %v3761_v28, 1 }
 0x1b3   : > { %2797 = vmatprep.mubr.f32.mxu1 %v1180_v30  ;;  %2842 = vmatmul.mubr.f32.gmra.mxu0 %v1345_v33  ;;  %v1508_v30 = vld [vmem:[#allocation8 + $0x300] sm:$0xff]  ;;  %v1661_v33 = vsel %vm581_vm0, %v3626_v58, %v1660_v6  ;;  %v362_v6 = vld [vmem:[#allocation9 + $0x28] sm:$0xff] }
 0x1b4   : > { %2852 = vmatpush3.msra.mxu1 %v1521_v25  ;;  %2899 = vmatprep.subr.mxu0 %v1697_v31  ;;  %v1509_v25 = vld [vmem:[#allocation8 + $0x308] sm:$0xff]  ;;  %v1667_v58 = vsel %vm581_vm0, %v3643_v7, %v1666_v36 }
 0x1b5   : > { %2844 = vmatprep.mubr.f32.mxu0 %v1348_v23  ;;  %2853 = vmatprep.subr.mxu1 %v1520_v34  ;;  %v3769_v23 = vld [vmem:[#allocation2 + $0x78] sm:$0x3] }
 0x1b6   : > { %2900 = vmatpush3.msra.mxu0 %v1697_v31  ;;  %2854 = vmatpush3.msra.mxu1 %v1520_v34  ;;  %v1658_v31 = vsel %vm581_vm0, %v3616_v52, %v1657_v22  ;;  %v1863_v34 = vld [vmem:[#allocation8 + $0x478] sm:$0xff]  ;;  %v1664_v52 = vsel %vm581_vm0, %v3633_v0, %v1663_v32  ;;  %v3786_v0 = vld [vmem:[#allocation2] sm:$0xff] }
 0x1b7   : > { %2901 = vmatprep.subr.mxu0 %v1696_v29  ;;  %2798 = vmatmul.mubr.f32.gmra.mxu1 %v1183_v43  ;;  %v1674_v7 = vrot.slane %v3786_v0, 1  ;;  %v364_v22 = vld [vmem:[#allocation9 + $0x38] sm:$0xff]  ;;  %v357_v32 = vld [vmem:[#allocation9] sm:$0xff] }
 0x1b8   : > { %2855 = vmatprep.subr.mxu1 %v1519_v59  ;;  %2902 = vmatpush3.msra.mxu0 %v1696_v29  ;;  %v3771_v29 = vld [vmem:[#allocation2 + $0x88] sm:$0x3] }
 0x1b9   : > { %2800 = vmatprep.mubr.f32.mxu1 %v1186_v44  ;;  %2845 = vmatmul.mubr.f32.gmra.mxu0 %v1351_v55  ;;  %v1672_v43 = vrot.slane %v3771_v29, 1  ;;  %v1675_v44 = vrot.slane %v3781_v26, 1  ;;  %v1816_v55 = vrot.slane %v3735_v38, 2  ;;  %v1854_v38 = vld [vmem:[#allocation8 + $0x430] sm:$0xff] }
 0x1ba   : > { %2856 = vmatpush3.msra.mxu1 %v1519_v59  ;;  %2903 = vmatprep.subr.mxu0 %v1695_v45  ;;  %v1669_v59 = vrot.slane %v3769_v23, 1 }
 0x1bb   : > { %2857 = vmatprep.subr.mxu1 %v1518_v49  ;;  %2904 = vmatpush3.msra.mxu0 %v1695_v45  ;;  %v1673_v45 = vsel %vm581_vm0, %v1187_v51, %v1672_v43  ;;  %v1856_v51 = vld [vmem:[#allocation8 + $0x440] sm:$0xff]  ;;  %v1817_v56 = vsel %vm841_vm1, %v3661_v39, %v1816_v55  ;;  %v1849_v39 = vld [vmem:[#allocation8 + $0x408] sm:$0xff] }
 0x1bc   : > { %2923 = vmatprep.mubr.f32.mxu0 %v1655_v47  ;;  %2858 = vmatpush3.msra.mxu1 %v1518_v49  ;;  %v1676_v49 = vsel %vm581_vm0, %v1674_v7, %v1675_v44  ;;  %v1852_v47 = vld [vmem:[#allocation8 + $0x420] sm:$0xff] }
 0x1bd   : > { %2905 = vmatprep.subr.mxu0 %v1694_v60  ;;  %2801 = vmatmul.mubr.f32.gmra.mxu1 %v1189_v62  ;;  %v1850_v62 = vld [vmem:[#allocation8 + $0x410] sm:$0xff] }
 0x1be   : > { %2859 = vmatprep.subr.mxu1 %v1517_v61  ;;  %2906 = vmatpush3.msra.mxu0 %v1694_v60  ;;  %v1853_v60 = vld [vmem:[#allocation8 + $0x428] sm:$0xff] }
 0x1bf   : > { %2860 = vmatpush3.msra.mxu1 %v1517_v61  ;;  %2879 = vmatprep.mubr.f32.mxu1 %v3579_v18  ;;  %v1512_v18 = vld [vmem:[#allocation8 + $0x320] sm:$0xff]  ;;  %v1851_v61 = vld [vmem:[#allocation8 + $0x418] sm:$0xff] }
 0x1c0   : > { %2907 = vmatprep.subr.mxu0 %v1693_v54  ;;  %2861 = vmatprep.subr.mxu1 %v1516_v1 }
 0x1c1   : > { %2908 = vmatpush3.msra.mxu0 %v1693_v54  ;;  %2862 = vmatpush3.msra.mxu1 %v1516_v1  ;;  %v1848_v54 = vld [vmem:[#allocation8 + $0x400] sm:$0xff]  ;;  %v1819_v1 = vrot.slane %v3753_v2, 2 }
 0x1c2   : > { %2909 = vmatprep.subr.mxu0 %v1692_v4  ;;  %2863 = vmatprep.subr.mxu1 %v1515_v24 }
 0x1c3   : > { %2910 = vmatpush3.msra.mxu0 %v1692_v4  ;;  %2864 = vmatpush3.msra.mxu1 %v1515_v24  ;;  %v1822_v4 = vrot.slane %v3755_v17, 2  ;;  %v1820_v24 = vsel %vm841_vm1, %v3673_v19, %v1819_v1  ;;  %v1834_v19 = vrot.slane %v3771_v29, 2  ;;  %v370_v17 = vld [vmem:[#allocation9 + $0x68] sm:$0xff] }
 0x1c4   : > { %2911 = vmatprep.subr.mxu0 %v1691_v5  ;;  %2865 = vmatprep.subr.mxu1 %v1514_v8 }
 0x1c5   : > { %2912 = vmatpush3.msra.mxu0 %v1691_v5  ;;  %2866 = vmatpush3.msra.mxu1 %v1514_v8  ;;  %v1825_v5 = vrot.slane %v3759_v27, 2  ;;  %v1823_v8 = vsel %vm841_vm1, %v3677_v53, %v1822_v4  ;;  %v361_v27 = vld [vmem:[#allocation9 + $0x20] sm:$0xff] }
 0x1c6   : > { %2913 = vmatprep.subr.mxu0 %v1690_v9  ;;  %2867 = vmatprep.subr.mxu1 %v1513_v57 }
 0x1c7   : > { %2914 = vmatpush3.msra.mxu0 %v1690_v9  ;;  %2868 = vmatpush3.msra.mxu1 %v1513_v57  ;;  %v1828_v9 = vrot.slane %v3761_v28, 2  ;;  %v1826_v57 = vsel %vm841_vm1, %v3687_v63, %v1825_v5  ;;  %v1835_v63 = vsel %vm841_vm1, %v1349_v48, %v1834_v19  ;;  %v367_v48 = vld [vmem:[#allocation9 + $0x50] sm:$0xff]  ;;  %v360_v28 = vld [vmem:[#allocation9 + $0x18] sm:$0xff] }
 0x1c8   : > { %2915 = vmatprep.subr.mxu0 %v1689_v10  ;;  %2869 = vmatprep.subr.mxu1 %v1512_v18 }
 0x1c9   : > { %2916 = vmatpush3.msra.mxu0 %v1689_v10  ;;  %2870 = vmatpush3.msra.mxu1 %v1512_v18  ;;  %v1831_v10 = vrot.slane %v3769_v23, 2  ;;  %v1829_v18 = vsel %vm841_vm1, %v3691_v3, %v1828_v9  ;;  %v372_v3 = vld [vmem:[#allocation9 + $0x78] sm:$0xff] }
 0x1ca   : > { %2917 = vmatprep.subr.mxu0 %v1688_v11  ;;  %2871 = vmatprep.subr.mxu1 %v1511_v13 }
 0x1cb   : > { %2918 = vmatpush3.msra.mxu0 %v1688_v11  ;;  %2872 = vmatpush3.msra.mxu1 %v1511_v13  ;;  %v1836_v11 = vrot.slane %v3786_v0, 2  ;;  %v1837_v13 = vrot.slane %v3781_v26, 2  ;;  %v1832_v53 = vsel %vm841_vm1, %v3701_v14, %v1831_v10  ;;  %v369_v14 = vld [vmem:[#allocation9 + $0x60] sm:$0xff] }
 0x1cc   : > { %2919 = vmatprep.subr.mxu0 %v1687_v16  ;;  %2873 = vmatprep.subr.mxu1 %v1510_v20 }
 0x1cd   : > { %2920 = vmatpush3.msra.mxu0 %v1687_v16  ;;  %2874 = vmatpush3.msra.mxu1 %v1510_v20  ;;  %v1838_v2 = vsel %vm841_vm1, %v1836_v11, %v1837_v13  ;;  %v371_v16 = vld [vmem:[#allocation9 + $0x70] sm:$0xff]  ;;  %v366_v20 = vld [vmem:[#allocation9 + $0x48] sm:$0xff] }
 0x1ce   : > { %2921 = vmatprep.subr.mxu0 %v1686_v21  ;;  %2875 = vmatprep.subr.mxu1 %v1509_v25 }
 0x1cf   : > { %2922 = vmatpush3.msra.mxu0 %v1686_v21  ;;  %2876 = vmatpush3.msra.mxu1 %v1509_v25  ;;  %v365_v21 = vld [vmem:[#allocation9 + $0x40] sm:$0xff]  ;;  %v363_v25 = vld [vmem:[#allocation9 + $0x30] sm:$0xff] }
 0x1d0   : > { %2924 = vmatmul.mubr.f32.vlgmr.msra.gmra.mxu0 %v1658_v31  ;;  %2877 = vmatprep.subr.mxu1 %v1508_v30  ;;  %v358_v31 = vld [vmem:[#allocation9 + $0x8] sm:$0xff] }
 0x1d1   : > { %2926 = vmatprep.mubr.f32.mxu0 %v1661_v33  ;;  %2878 = vmatpush3.msra.mxu1 %v1508_v30  ;;  %v359_v30 = vld [vmem:[#allocation9 + $0x10] sm:$0xff] }
 0x1d2   : > { %2880 = vmatmul.mubr.f32.vlgmr.msra.gmra.mxu1 %v3598_v35  ;;  %2935 = vmatprep.subr.mxu1 %v1863_v34  ;;  %v1670_v35 = vsel %vm581_vm0, %v3649_v12, %v1669_v59  ;;  %v1858_v12 = vld [vmem:[#allocation8 + $0x450] sm:$0xff] }
 0x1d3   : > { %2882 = vmatprep.mubr.f32.mxu1 %v3603_v40  ;;  %2936 = vmatpush3.msra.mxu1 %v1863_v34  ;;  %v1860_v40 = vld [vmem:[#allocation8 + $0x460] sm:$0xff] }
 0x1d4   : > { %2927 = vmatmul.mubr.f32.gmra.mxu0 %v1664_v52  ;;  %2937 = vmatprep.subr.mxu1 %v1862_v37 }
 0x1d5   : > { %2929 = vmatprep.mubr.f32.mxu0 %v1667_v58  ;;  %2938 = vmatpush3.msra.mxu1 %v1862_v37 }
 0x1d6   : > { %2883 = vmatmul.mubr.f32.gmra.mxu1 %v3605_v42  ;;  %2939 = vmatprep.subr.mxu1 %v1861_v41  ;;  %v1859_v42 = vld [vmem:[#allocation8 + $0x458] sm:$0xff] }
 0x1d7   : > { %2885 = vmatprep.mubr.f32.mxu1 %v3609_v46  ;;  %2940 = vmatpush3.msra.mxu1 %v1861_v41  ;;  %v1857_v46 = vld [vmem:[#allocation8 + $0x448] sm:$0xff] }
 0x1d8   : > { %2930 = vmatmul.mubr.f32.gmra.mxu0 %v1670_v35  ;;  %2941 = vmatprep.subr.mxu1 %v1860_v40 }
 0x1d9   : > { %2932 = vmatprep.mubr.f32.mxu0 %v1673_v45  ;;  %2942 = vmatpush3.msra.mxu1 %v1860_v40 }
 0x1da   : > { %2886 = vmatmul.mubr.f32.gmra.mxu1 %v3613_v50  ;;  %2943 = vmatprep.subr.mxu1 %v1859_v42  ;;  %v1855_v50 = vld [vmem:[#allocation8 + $0x438] sm:$0xff] }
 0x1db   : > { %2888 = vmatprep.mubr.f32.mxu1 %v3703_v15  ;;  %2944 = vmatpush3.msra.mxu1 %v1859_v42  ;;  %v368_v15 = vld [vmem:[#allocation9 + $0x58] sm:$0xff] }
 0x1dc   : > { %2945 = vmatprep.subr.mxu1 %v1858_v12  ;;  %2933 = vmatmul.mubr.f32.gmra.mxu0 %v1676_v49 }
 0x1dd   : > { %2946 = vmatpush3.msra.mxu1 %v1858_v12  ;;  %2979 = vmatprep.subr.mxu0 %v372_v3 }
 0x1de   : > { %2889 = vmatmul.mubr.f32.gmra.mxu1 %v3786_v0  ;;  %2947 = vmatprep.subr.mxu1 %v1857_v46 }
 0x1df   : > { %2948 = vmatpush3.msra.mxu1 %v1857_v46  ;;  %2967 = vmatprep.mubr.f32.mxu1 %v1817_v56 }
 0x1e0   : > { %2949 = vmatprep.subr.mxu1 %v1856_v51  ;;  %2980 = vmatpush3.msra.mxu0 %v372_v3 }
 0x1e1   : > { %2950 = vmatpush3.msra.mxu1 %v1856_v51  ;;  %2981 = vmatprep.subr.mxu0 %v371_v16 }
 0x1e2   : > { %2951 = vmatprep.subr.mxu1 %v1855_v50  ;;  %2982 = vmatpush3.msra.mxu0 %v371_v16 }
 0x1e3   : > { %2952 = vmatpush3.msra.mxu1 %v1855_v50  ;;  %2983 = vmatprep.subr.mxu0 %v370_v17 }
 0x1e4   : > { %2953 = vmatprep.subr.mxu1 %v1854_v38  ;;  %2984 = vmatpush3.msra.mxu0 %v370_v17 }
 0x1e5   : > { %2954 = vmatpush3.msra.mxu1 %v1854_v38  ;;  %2985 = vmatprep.subr.mxu0 %v369_v14 }
 0x1e6   : > { %2955 = vmatprep.subr.mxu1 %v1853_v60  ;;  %2986 = vmatpush3.msra.mxu0 %v369_v14 }
 0x1e7   : > { %2956 = vmatpush3.msra.mxu1 %v1853_v60  ;;  %2987 = vmatprep.subr.mxu0 %v368_v15 }
 0x1e8   : > { %2957 = vmatprep.subr.mxu1 %v1852_v47  ;;  %2988 = vmatpush3.msra.mxu0 %v368_v15 }
 0x1e9   : > { %2958 = vmatpush3.msra.mxu1 %v1852_v47  ;;  %2989 = vmatprep.subr.mxu0 %v367_v48 }
 0x1ea   : > { %2959 = vmatprep.subr.mxu1 %v1851_v61  ;;  %2990 = vmatpush3.msra.mxu0 %v367_v48 }
 0x1eb   : > { %2960 = vmatpush3.msra.mxu1 %v1851_v61  ;;  %2991 = vmatprep.subr.mxu0 %v366_v20 }
 0x1ec   : > { %2961 = vmatprep.subr.mxu1 %v1850_v62  ;;  %2992 = vmatpush3.msra.mxu0 %v366_v20 }
 0x1ed   : > { %2962 = vmatpush3.msra.mxu1 %v1850_v62  ;;  %2993 = vmatprep.subr.mxu0 %v365_v21 }
 0x1ee   : > { %2963 = vmatprep.subr.mxu1 %v1849_v39  ;;  %2994 = vmatpush3.msra.mxu0 %v365_v21 }
 0x1ef   : > { %2964 = vmatpush3.msra.mxu1 %v1849_v39  ;;  %2995 = vmatprep.subr.mxu0 %v364_v22 }
 0x1f0   : > { %2965 = vmatprep.subr.mxu1 %v1848_v54  ;;  %2996 = vmatpush3.msra.mxu0 %v364_v22 }
 0x1f1   : > { %2966 = vmatpush3.msra.mxu1 %v1848_v54  ;;  %2997 = vmatprep.subr.mxu0 %v363_v25 }
 0x1f2   : > { %2968 = vmatmul.mubr.f32.vlgmr.msra.gmra.mxu1 %v1820_v24  ;;  %3023 = vmatprep.subr.mxu1 %v372_v3 }
 0x1f3   : > { %2970 = vmatprep.mubr.f32.mxu1 %v1823_v8  ;;  %3039 = vmatpush3.msra.mxu1 %v372_v3 }
 0x1f4   : > { %3024 = vmatprep.subr.mxu1 %v371_v16  ;;  %2998 = vmatpush3.msra.mxu0 %v363_v25 }
 0x1f5   : > { %3040 = vmatpush3.msra.mxu1 %v371_v16  ;;  %2999 = vmatprep.subr.mxu0 %v362_v6 }
 0x1f6   : > { %2971 = vmatmul.mubr.f32.gmra.mxu1 %v1826_v57  ;;  %3025 = vmatprep.subr.mxu1 %v370_v17 }
 0x1f7   : > { %2973 = vmatprep.mubr.f32.mxu1 %v1829_v18  ;;  %3041 = vmatpush3.msra.mxu1 %v370_v17 }
 0x1f8   : > { %3026 = vmatprep.subr.mxu1 %v369_v14  ;;  %3000 = vmatpush3.msra.mxu0 %v362_v6 }
 0x1f9   : > { %3042 = vmatpush3.msra.mxu1 %v369_v14  ;;  %3001 = vmatprep.subr.mxu0 %v361_v27 }
 0x1fa   : > { %2974 = vmatmul.mubr.f32.gmra.mxu1 %v1832_v53  ;;  %3027 = vmatprep.subr.mxu1 %v368_v15 }
 0x1fb   : > { %2976 = vmatprep.mubr.f32.mxu1 %v1835_v63  ;;  %3043 = vmatpush3.msra.mxu1 %v368_v15 }
 0x1fc   : > { %3028 = vmatprep.subr.mxu1 %v367_v48  ;;  %3002 = vmatpush3.msra.mxu0 %v361_v27 }
 0x1fd   : > { %3044 = vmatpush3.msra.mxu1 %v367_v48  ;;  %3003 = vmatprep.subr.mxu0 %v360_v28 }
 0x1fe   : > { %2977 = vmatmul.mubr.f32.gmra.mxu1 %v1838_v2  ;;  %3029 = vmatprep.subr.mxu1 %v366_v20 }
 0x1ff   : > { %3045 = vmatpush3.msra.mxu1 %v366_v20  ;;  %3004 = vmatpush3.msra.mxu0 %v360_v28 }
 0x200   : > { %3030 = vmatprep.subr.mxu1 %v365_v21  ;;  %3005 = vmatprep.subr.mxu0 %v359_v30 }
 0x201   : > { %3046 = vmatpush3.msra.mxu1 %v365_v21  ;;  %3006 = vmatpush3.msra.mxu0 %v359_v30 }
 0x202   : > { %3031 = vmatprep.subr.mxu1 %v364_v22  ;;  %3007 = vmatprep.subr.mxu0 %v358_v31 }
 0x203   : > { %3047 = vmatpush3.msra.mxu1 %v364_v22  ;;  %3008 = vmatpush3.msra.mxu0 %v358_v31 }
 0x204   : > { %3032 = vmatprep.subr.mxu1 %v363_v25  ;;  %3009 = vmatprep.subr.mxu0 %v357_v32 }
 0x205   : > { %3048 = vmatpush3.msra.mxu1 %v363_v25  ;;  %3010 = vmatpush3.msra.mxu0 %v357_v32 }
 0x206   : > { %3033 = vmatprep.subr.mxu1 %v362_v6 }
 0x207   : > { %3049 = vmatpush3.msra.mxu1 %v362_v6 }
 0x208   : > { %3034 = vmatprep.subr.mxu1 %v361_v27 }
 0x209   : > { %3050 = vmatpush3.msra.mxu1 %v361_v27 }
 0x20a   : > { %3035 = vmatprep.subr.mxu1 %v360_v28 }
 0x20b   : > { %3051 = vmatpush3.msra.mxu1 %v360_v28 }
 0x20c   : > { %3036 = vmatprep.subr.mxu1 %v359_v30 }
 0x20d   : > { %3052 = vmatpush3.msra.mxu1 %v359_v30 }
 0x20e   : > { %3037 = vmatprep.subr.mxu1 %v358_v31 }
 0x20f   : > { %3053 = vmatpush3.msra.mxu1 %v358_v31 }
 0x210   : > { %3038 = vmatprep.subr.mxu1 %v357_v32 }
 0x211   : > { %3054 = vmatpush3.msra.mxu1 %v357_v32 }
 0x219   : > { %v2661_v29 = vpop.f32.mrf.mxu0 }
 0x21b   : > { %v802_v37 = vpop.f32.mrf.mxu0 }
 0x21c   : > { %v2617_v33 = vpop.f32.mrf.mxu1 }
 0x21d   : > { %v808_v17 = vadd.f32 %v2661_v29, %v2617_v33 }
 0x21e   : > { %v697_v34 = vpop.f32.mrf.mxu1  ;;  %v2664_v59 = vpop.f32.mrf.mxu0 }
 0x21f   : > { %v803_v48 = vadd.f32 %v802_v37, %v697_v34 }
 0x220   : > { %v812_v43 = vpop.f32.mrf.mxu0 }
 0x223   : > { %v2667_v35 = vpop.f32.mrf.mxu0 }
 0x225   : > { %v822_v0 = vpop.f32.mrf.mxu0 }
 0x228   : > { %v2670_v44 = vpop.f32.mrf.mxu0 }
 0x22a   : > { %v832_v42 = vpop.f32.mrf.mxu0 }
 0x22d   : > { %v2620_v36 = vpop.f32.mrf.mxu1 }
 0x22e   : > { %v818_v22 = vadd.f32 %v2664_v59, %v2620_v36 }
 0x22f   : > { %v707_v23 = vpop.f32.mrf.mxu1 }
 0x230   : > { %v813_v27 = vadd.f32 %v812_v43, %v707_v23 }
 0x232   : > { %v2623_v52 = vpop.f32.mrf.mxu1 }
 0x233   : > { %v828_v32 = vadd.f32 %v2667_v35, %v2623_v52 }
 0x234   : > { %v717_v58 = vpop.f32.mrf.mxu1 }
 0x237   : > { %v3823_v41 = vpop.f32.mrf.mxu1 }
 0x238   : > { %v838_v34 = vadd.f32 %v2670_v44, %v3823_v41 }
 0x239   : > { %v3825_v26 = vpop.f32.mrf.mxu1 }
 0x23a   : > { %3950 = vst [vmem:[#allocation16_spill] sm:$0xff] %v3825_v26  ;;  %v823_v26 = vadd.f32 %v822_v0, %v717_v58 }
 0x23f   : > { %v2749_v49 = vpop.f32.mrf.mxu0 }
 0x241   : > { %v1103_v46 = vpop.f32.mrf.mxu0  ;;  %v3956_v23 = vld [vmem:[#allocation16_spill] sm:$0xff] }
 0x242   : > { %v833_v43 = vadd.f32 %v832_v42, %v3956_v23 }
 0x243   : > { %v2705_v40 = vpop.f32.mrf.mxu1 }
 0x244   : > { %v997_v20 = vadd.f32 %v2705_v40, %v808_v17 }
 0x245   : > { %v957_v7 = vpop.f32.mrf.mxu1  ;;  %v2752_v56 = vpop.f32.mrf.mxu0 }
 0x246   : > { %v996_v25 = vadd.f32 %v957_v7, %v803_v48  ;;  %v1143_v30 = vadd.f32 %v2749_v49, %v997_v20 }
 0x247   : > { %v1113_v38 = vpop.f32.mrf.mxu0 }
 0x249   : > { %v2708_v45 = vpop.f32.mrf.mxu1 }
 0x24a   : > { %v999_v28 = vadd.f32 %v2708_v45, %v818_v22 }
 0x24b   : > { %v967_v12 = vpop.f32.mrf.mxu1  ;;  %v2755_v47 = vpop.f32.mrf.mxu0 }
 0x24d   : > { %v1123_v62 = vpop.f32.mrf.mxu0 }
 0x24f   : > { %v2711_v55 = vpop.f32.mrf.mxu1 }
 0x250   : > { %v1001_v33 = vadd.f32 %v2711_v55, %v828_v32 }
 0x251   : > { %v977_v51 = vpop.f32.mrf.mxu1  ;;  %v2758_v54 = vpop.f32.mrf.mxu0 }
 0x252   : > { %v1000_v40 = vadd.f32 %v977_v51, %v823_v26  ;;  %v1147_v35 = vadd.f32 %v2755_v47, %v1001_v33 }
 0x253   : > { %v3827_v4 = vpop.f32.mrf.mxu0 }
 0x254   : > { %3951 = vst [vmem:[#allocation17_spill] sm:$0xff] %v3827_v4  ;;  %v1142_v4 = vadd.f32 %v1103_v46, %v996_v25  ;;  %v1146_v55 = vadd.f32 %v1123_v62, %v1000_v40 }
 0x255   : > { %v2714_v50 = vpop.f32.mrf.mxu1 }
 0x256   : > { %v1003_v45 = vadd.f32 %v2714_v50, %v838_v34 }
 0x257   : > { %v987_v60 = vpop.f32.mrf.mxu1 }
 0x258   : > { %v1149_v41 = vadd.f32 %v2758_v54, %v1003_v45 }
 0x25b   : > { %v3957_v42 = vld [vmem:[#allocation17_spill] sm:$0xff] }
 0x268   : > { %v2837_v5 = vpop.f32.mrf.mxu0 }
 0x26a   : > { %v1443_v9 = vpop.f32.mrf.mxu0 }
 0x26b   : > { %v2793_v61 = vpop.f32.mrf.mxu1 }
 0x26d   : > { %v1281_v39 = vpop.f32.mrf.mxu1  ;;  %v2840_v10 = vpop.f32.mrf.mxu0 }
 0x26e   : > { %v1320_v29 = vadd.f32 %v1281_v39, %v1142_v4 }
 0x26f   : > { %v1453_v19 = vpop.f32.mrf.mxu0 }
 0x270   : > { %v1482_v46 = vadd.f32 %v1443_v9, %v1320_v29 }
 0x271   : > { %v2796_v1 = vpop.f32.mrf.mxu1 }
 0x273   : > { %v1291_v24 = vpop.f32.mrf.mxu1  ;;  %v2843_v13 = vpop.f32.mrf.mxu0 }
 0x275   : > { %v3831_v63 = vpop.f32.mrf.mxu0 }
 0x276   : > { %3953 = vst [vmem:[#allocation19_spill] sm:$0xff] %v3831_v63  ;;  %v998_v63 = vadd.f32 %v967_v12, %v813_v27 }
 0x277   : > { %v2799_v8 = vpop.f32.mrf.mxu1 }
 0x278   : > { %v1144_v59 = vadd.f32 %v1113_v38, %v998_v63  ;;  %v1325_v0 = vadd.f32 %v2799_v8, %v1147_v35 }
 0x279   : > { %v1301_v57 = vpop.f32.mrf.mxu1  ;;  %v3833_v3 = vpop.f32.mrf.mxu0 }
 0x27a   : > { %3954 = vst [vmem:[#allocation20_spill] sm:$0xff] %v3833_v3  ;;  %v1322_v52 = vadd.f32 %v1291_v24, %v1144_v59  ;;  %v1324_v26 = vadd.f32 %v1301_v57, %v1146_v55 }
 0x27b   : > { %v3835_v14 = vpop.f32.mrf.mxu0 }
 0x27c   : > { %3955 = vst [vmem:[#allocation21_spill] sm:$0xff] %v3835_v14  ;;  %v1145_v14 = vadd.f32 %v2752_v56, %v999_v28  ;;  %v1484_v38 = vadd.f32 %v1453_v19, %v1322_v52 }
 0x27d   : > { %v2802_v18 = vpop.f32.mrf.mxu1 }
 0x27e   : > { %v1323_v36 = vadd.f32 %v2796_v1, %v1145_v14  ;;  %v1327_v4 = vadd.f32 %v2802_v18, %v1149_v41 }
 0x27f   : > { %v3829_v11 = vpop.f32.mrf.mxu1 }
 0x280   : > { %3952 = vst [vmem:[#allocation18_spill] sm:$0xff] %v3829_v11  ;;  %v1321_v11 = vadd.f32 %v2793_v61, %v1143_v30  ;;  %v1002_v61 = vadd.f32 %v987_v60, %v833_v43  ;;  %v1485_v39 = vadd.f32 %v2840_v10, %v1323_v36  ;;  %v2266_v60 = vld [vmem:[%s3924_s4] ss:$0 sm:$0xff] }
 0x282   : > { %v1483_v7 = vadd.f32 %v2837_v5, %v1321_v11  ;;  %v1148_v50 = vadd.f32 %v3957_v42, %v1002_v61  ;;  %v1487_v11 = vadd.f32 %v2843_v13, %v1325_v0  ;;  %v3138_v42 = vld [vmem:[%s3529_s12 + $0x8] sm:$0xff] }
 0x283   : > { %v3961_v22 = vld [vmem:[#allocation21_spill] sm:$0xff] }
 0x287   : > { %v3958_v9 = vld [vmem:[#allocation18_spill] sm:$0xff] }
 0x288   : > { %v1326_v54 = vadd.f32 %v3958_v9, %v1148_v50 }
 0x28a   : > { %v1488_v25 = vadd.f32 %v3961_v22, %v1326_v54  ;;  %v3140_v54 = vld [vmem:[%s3529_s12 + $0x18] sm:$0xff] }
 0x290   : > { %v2925_v21 = vpop.f32.mrf.mxu0 }
 0x292   : > { %v2881_v53 = vpop.f32.mrf.mxu1  ;;  %v1768_v31 = vpop.f32.mrf.mxu0 }
 0x293   : > { %v1630_v12 = vadd.f32 %v2881_v53, %v1483_v7  ;;  %v3959_v53 = vld [vmem:[#allocation19_spill] sm:$0xff] }
 0x294   : > { %v1590_v2 = vpop.f32.mrf.mxu1  ;;  %v2928_v37 = vpop.f32.mrf.mxu0  ;;  %v1486_v19 = vadd.f32 %v3959_v53, %v1324_v26 }
 0x295   : > { %v1629_v56 = vadd.f32 %v1590_v2, %v1482_v46  ;;  %v1808_v1 = vadd.f32 %v2925_v21, %v1630_v12 }
 0x296   : > { %v2884_v16 = vpop.f32.mrf.mxu1  ;;  %v1778_v58 = vpop.f32.mrf.mxu0 }
 0x297   : > { %v1632_v51 = vadd.f32 %v2884_v16, %v1485_v39  ;;  %v1807_v8 = vadd.f32 %v1768_v31, %v1629_v56  ;;  %v3960_v16 = vld [vmem:[#allocation20_spill] sm:$0xff] }
 0x298   : > { %v1600_v15 = vpop.f32.mrf.mxu1  ;;  %v2931_v5 = vpop.f32.mrf.mxu0  ;;  %v1489_v17 = vadd.f32 %v3960_v16, %v1327_v4 }
 0x299   : > { %v1631_v47 = vadd.f32 %v1600_v15, %v1484_v38  ;;  %v1810_v18 = vadd.f32 %v2928_v37, %v1632_v51  ;;  %v2267_v51 = vld [vmem:[%s3926_s6] ss:$0 sm:$0xff] }
 0x29a   : > { %v2887_v6 = vpop.f32.mrf.mxu1  ;;  %v1788_v2 = vpop.f32.mrf.mxu0 }
 0x29b   : > { %v1634_v57 = vadd.f32 %v2887_v6, %v1487_v11  ;;  %v1809_v21 = vadd.f32 %v1778_v58, %v1631_v47  ;;  %v3139_v11 = vld [vmem:[%s3529_s12] sm:$0xff] }
 0x29c   : > { %v1610_v3 = vpop.f32.mrf.mxu1  ;;  %v2934_v27 = vpop.f32.mrf.mxu0 }
 0x29d   : > { %v1633_v13 = vadd.f32 %v1610_v3, %v1486_v19  ;;  %v1812_v32 = vadd.f32 %v2931_v5, %v1634_v57 }
 0x29e   : > { %v2890_v49 = vpop.f32.mrf.mxu1  ;;  %v1798_v3 = vpop.f32.mrf.mxu0 }
 0x29f   : > { %v1636_v30 = vadd.f32 %v2890_v49, %v1489_v17  ;;  %v1811_v59 = vadd.f32 %v1788_v2, %v1633_v13 }
 0x2a0   : > { %v1620_v44 = vpop.f32.mrf.mxu1 }
 0x2a1   : > { %v1635_v37 = vadd.f32 %v1620_v44, %v1488_v25  ;;  %v1814_v23 = vadd.f32 %v2934_v27, %v1636_v30  ;;  %v3144_v30 = vld [vmem:[%s3529_s12 + $0x38] sm:$0xff] }
 0x2a3   : > { %v1813_v12 = vadd.f32 %v1798_v3, %v1635_v37 }
 0x2b2   : > { %v2969_v24 = vpop.f32.mrf.mxu1 }
 0x2b3   : > { %v1970_v62 = vadd.f32 %v2969_v24, %v1808_v1 }
 0x2b4   : > { %v1930_v10 = vpop.f32.mrf.mxu1 }
 0x2b5   : > { %v1969_v63 = vadd.f32 %v1930_v10, %v1807_v8  ;;  %v1984_v14 = vadd.f32 %v2266_v60, %v1970_v62 }
 0x2b6   : > { %v2972_v15 = vpop.f32.mrf.mxu1 }
 0x2b7   : > { %v1983_v48 = vadd.f32 %v2266_v60, %v1969_v63  ;;  %v1972_v20 = vadd.f32 %v2972_v15, %v1810_v18  ;;  %v1992_v33 = vmax.f32 %v1984_v14, 0.0  ;;  %v3141_v63 = vld [vmem:[%s3529_s12 + $0x10] sm:$0xff]  ;;  %v3142_v14 = vld [vmem:[%s3529_s12 + $0x28] sm:$0xff] }
 0x2b8   : > { %v1940_v28 = vpop.f32.mrf.mxu1 }
 0x2b9   : > { %v1991_v31 = vmax.f32 %v1983_v48, 0.0  ;;  %v1971_v6 = vadd.f32 %v1940_v28, %v1809_v21  ;;  %v1986_v29 = vadd.f32 %v2266_v60, %v1972_v20  ;;  %v3143_v21 = vld [vmem:[%s3529_s12 + $0x20] sm:$0xff] }
 0x2ba   : > { %v2975_v34 = vpop.f32.mrf.mxu1 }
 0x2bb   : > { %v1985_v40 = vadd.f32 %v2266_v60, %v1971_v6  ;;  %v1974_v36 = vadd.f32 %v2975_v34, %v1812_v32  ;;  %3011 = vmatprep.mubr.f32.mxu0 %v1991_v31  ;;  %v1994_v52 = vmax.f32 %v1986_v29, 0.0 }
 0x2bc   : > { %v1950_v7 = vpop.f32.mrf.mxu1  ;;  %3012 = vmatmul.mubr.f32.vlgmr.msra.gmra.mxu0 %v1992_v33  ;;  %v3145_v33 = vld [vmem:[%s3529_s12 + $0x30] sm:$0xff] }
 0x2bd   : > { %v1993_v43 = vmax.f32 %v1985_v40, 0.0  ;;  %v1973_v45 = vadd.f32 %v1950_v7, %v1811_v59  ;;  %v1988_v35 = vadd.f32 %v2266_v60, %v1974_v36 }
 0x2be   : > { %v2978_v49 = vpop.f32.mrf.mxu1 }
 0x2bf   : > { %v1987_v46 = vadd.f32 %v2266_v60, %v1973_v45  ;;  %v1976_v61 = vadd.f32 %v2978_v49, %v1814_v23  ;;  %3014 = vmatprep.mubr.f32.mxu0 %v1993_v43  ;;  %v1996_v56 = vmax.f32 %v1988_v35, 0.0 }
 0x2c0   : > { %v1960_v58 = vpop.f32.mrf.mxu1  ;;  %3015 = vmatmul.mubr.f32.gmra.mxu0 %v1994_v52 }
 0x2c1   : > { %v1995_v0 = vmax.f32 %v1987_v46, 0.0  ;;  %v1975_v55 = vadd.f32 %v1960_v58, %v1813_v12  ;;  %v1990_v39 = vadd.f32 %v2266_v60, %v1976_v61 }
 0x2c3   : > { %v1989_v41 = vadd.f32 %v2266_v60, %v1975_v55  ;;  %3017 = vmatprep.mubr.f32.mxu1 %v1995_v0  ;;  %v1998_v26 = vmax.f32 %v1990_v39, 0.0 }
 0x2c4   : > { %3018 = vmatmul.mubr.f32.vlgmr.msra.gmra.mxu1 %v1996_v56 }
 0x2c5   : > { %v1997_v44 = vmax.f32 %v1989_v41, 0.0 }
 0x2c7   : > { %3020 = vmatprep.mubr.f32.mxu1 %v1997_v44 }
 0x2c8   : > { %3021 = vmatmul.mubr.f32.gmra.mxu1 %v1998_v26 }
 0x37c   : > { %v3013_v38 = vpop.f32.mrf.mxu0 }
 0x37d   : > { %v2077_v1 = vadd.f32 %v3013_v38, %v2267_v51 }
 0x37e   : > { %v2071_v4 = vpop.f32.mrf.mxu0 }
 0x37f   : > { %v2111_v50 = vadd.f32 %v3138_v42, %v2077_v1  ;;  %v2072_v5 = vadd.f32 %v2267_v51, %v2071_v4 }
 0x380   : > { %v3016_v24 = vpop.f32.mrf.mxu0 }
 0x381   : > { %v2119_v47 = vmax.f32 %v2111_v50, 0.0  ;;  %v2110_v60 = vadd.f32 %v3139_v11, %v2072_v5  ;;  %v2087_v62 = vadd.f32 %v3016_v24, %v2267_v51 }
 0x382   : > { %v2081_v8 = vpop.f32.mrf.mxu0 }
 0x383   : > { %2127 = vst [vmem:[%s3854_s11 + $0x8] sm:$0xff] %v2119_v47  ;;  %v2118_v9 = vmax.f32 %v2110_v60, 0.0  ;;  %v2113_v10 = vadd.f32 %v3140_v54, %v2087_v62  ;;  %v2082_v57 = vadd.f32 %v2267_v51, %v2081_v8 }
 0x384   : > { %v3019_v53 = vpop.f32.mrf.mxu1 }
 0x385   : > { %2126 = vst [vmem:[%s3854_s11] sm:$0xff] %v2118_v9  ;;  %v2121_v19 = vmax.f32 %v2113_v10, 0.0  ;;  %v2112_v18 = vadd.f32 %v3141_v63, %v2082_v57  ;;  %v2097_v2 = vadd.f32 %v3019_v53, %v2267_v51 }
 0x386   : > { %v2091_v16 = vpop.f32.mrf.mxu1 }
 0x387   : > { %2129 = vst [vmem:[%s3854_s11 + $0x18] sm:$0xff] %v2121_v19  ;;  %v2120_v17 = vmax.f32 %v2112_v18, 0.0  ;;  %v2115_v15 = vadd.f32 %v3142_v14, %v2097_v2  ;;  %v2092_v13 = vadd.f32 %v2267_v51, %v2091_v16 }
 0x388   : > { %v3022_v48 = vpop.f32.mrf.mxu1 }
 0x389   : > { %2128 = vst [vmem:[%s3854_s11 + $0x10] sm:$0xff] %v2120_v17  ;;  %v2123_v20 = vmax.f32 %v2115_v15, 0.0  ;;  %v2114_v22 = vadd.f32 %v3143_v21, %v2092_v13  ;;  %v2107_v25 = vadd.f32 %v3022_v48, %v2267_v51 }
 0x38a   : > { %v2101_v27 = vpop.f32.mrf.mxu1 }
 0x38b   : > { %2131 = vst [vmem:[%s3854_s11 + $0x28] sm:$0xff] %v2123_v20  ;;  %v2122_v28 = vmax.f32 %v2114_v22, 0.0  ;;  %v2117_v31 = vadd.f32 %v3144_v30, %v2107_v25  ;;  %v2102_v6 = vadd.f32 %v2267_v51, %v2101_v27 }
 0x38d   : > { %2130 = vst [vmem:[%s3854_s11 + $0x20] sm:$0xff] %v2122_v28  ;;  %v2125_v32 = vmax.f32 %v2117_v31, 0.0  ;;  %v2116_v29 = vadd.f32 %v3145_v33, %v2102_v6 }
 0x38f   : > { %2133 = vst [vmem:[%s3854_s11 + $0x38] sm:$0xff] %v2125_v32  ;;  %v2124_v34 = vmax.f32 %v2116_v29, 0.0 }
 0x391   : > { %2132 = vst [vmem:[%s3854_s11 + $0x30] sm:$0xff] %v2124_v34 }
 0x392   : > { %3265 = shalt.err (!%p3262_p10)
}
 0x393   : > { %s3266_s12 = scalar_lea.hbm %s3875_s1, 1024  ;;  %s3270_s29 = scalar_lea.hbm %s3927_s7, 2048 }
 0x394   : > { %p3267_p6 = scmp.ne.s32.totalorder %s3875_s1, %s3266_s12  ;;  %p3271_p3 = scmp.lt.s32.totalorder %s3875_s1, %s3927_s7 }
 0x395   : > { %p3272_p11 = scmp.lt.s32.totalorder %s3270_s29, %s3266_s12 }
 0x396   : > { %p3268_p4 = pnand %p3267_p6, %p3962_p1 }
 0x397   : > { %p3273_p5 = por %p3272_p11, %p3271_p3 }
 0x398   : > { %p3269_p8 = pneg %p3268_p4 }
 0x39a   : > { %p3274_p7 = pnand %p3273_p5, %p3269_p8 }
 0x39c   : > { %3277 = shalt.err (!%p3274_p7)
}
 0x39d   : > { %s3334_s18 = smov 128   ;;  %s3335_s23 = smov 8  }
 0x39e   : > { %3069 = dma.vmem_to_hbm [thread:$0]  (%p3962_p1), %s3868_s21, 1024, %s3875_s1, %s2135_s16, %s3334_s18, %s3334_s18, %s3335_s23  }
 0x39f PF: > { %s2163_s30 = sand.u32 1, %s3312_s24   ;;  %p3963_p12 = scmp.ne.s32.totalorder %s3936_s8, 0 }
 0x3a0   : > { %p3964_p9 = scmp.ge.s32.totalorder %s3324_s27, 2  ;;  %s2164_s28 = scalar_lea.sflag [#allocation5], %s2163_s30 }
 0x3a2   : > { %p3086_p13 = pnand %p3964_p9, %p3963_p12 }
 0x3a4   : > { %p3087_p0 = pneg %p3086_p13 }
 0x3a6   : > { %3307 = dma.done.wait (%p3087_p0), %s2164_s28, 1024  }
 0x3a7   : > { %3309 = vsyncadd (%p3087_p0), %s2164_s28, 4294966272  ;;  %p22_p2 = scmp.ge.s32.totalorder %s3465_s14, 4   ;;  %s3965_s24 = smov %s3316_s25 }
 0x3a8   : > { %s3966_s25 = smov %s3320_s26  ;;  %s3967_s26 = smov %s3475_s17 }
 0x3a9   : > { %s3968_s27 = smov %s3465_s14  ;;  %24 = sbr.rel (!%p22_p2) target bundleno = 9 (0x9), region = 116 }
 0x3ae   :  { %2169 = vsyncpa [#allocation4], 1 }
 0x3af   :  { %2171 = vsyncpa [#allocation4 + $0x1], 1 }
 0x3b0   :  { %2172 = vsyncpa [#allocation7], 1 }
 0x3b1   :  { %2173 = vsyncpa [#allocation10], 1 }
 0x3b2   :  { %2174 = vsyncpa [#allocation5], 1 }
 0x3b3   :  { %2176 = vsyncpa [#allocation5 + $0x1], 1 }

</bundles_post_ra>
